<compile_context>
chip_gen: v7x
topology: tpu7x:2x2x1
jax: 0.10.0
libtpu: 0.0.40
codegen_flags: <defaults>
</compile_context>

<pallas_src>
import functools

import jax
import jax.numpy as jnp
from jax.experimental import pallas as pl
from jax.experimental.pallas import tpu as pltpu

BN_EPS = 1e-5
NS_ITERS = 14   # Newton-Schulz iterations for the 8x8 blocks (quadratic convergence, f32-exact)


def _vmem_spec():
    # Whole-array block resident in VMEM (all operands here are tiny).
    return pl.BlockSpec(memory_space=pltpu.MemorySpace.VMEM)


def fused_model_kernel(x_ref, w1_ref, bgb_ref, w2_ref, b2_ref, mask_ref, o_ref, *,
                       num_groups, ns_iters):
    # ---- Linear -> BatchNorm1d(train) -> ReLU -> Linear ----
    x = x_ref[...]
    h = jnp.dot(x, w1_ref[...], preferred_element_type=jnp.float32) + bgb_ref[0:1, :]
    mu = jnp.mean(h, axis=0, keepdims=True)
    var = jnp.mean((h - mu) * (h - mu), axis=0, keepdims=True)
    h = (h - mu) * jax.lax.rsqrt(var + BN_EPS) * bgb_ref[1:2, :] + bgb_ref[2:3, :]
    h = jnp.maximum(h, 0.0)                                            # ReLU
    y = jnp.dot(h, w2_ref[...], preferred_element_type=jnp.float32) + b2_ref[...]

    # ---- ShuffledDBN ----
    # Per-column centering over the batch (permutation invariant).
    xc = y - jnp.mean(y, axis=0, keepdims=True)

    # F-wide Gram, contracting the batch axis directly on the MXU (no xc.T materialization).
    # NOTE: the reference divides by x.shape[0] AFTER transpose(0, 1), i.e. by num_groups
    # (not the batch size).  Reproduced exactly.
    gram = jax.lax.dot_general(xc, xc, (((0,), (0,)), ((), ())),
                               preferred_element_type=jnp.float32) * (1.0 / num_groups)

    f = gram.shape[0]
    rows = jax.lax.broadcasted_iota(jnp.int32, (f, f), 0)
    cols = jax.lax.broadcasted_iota(jnp.int32, (f, f), 1)
    eye = (rows == cols).astype(jnp.float32)

    # mask[i, j] == 1 iff original columns i and j fall in the same shuffled group, so
    # cov = gram * mask is the permutation-conjugated block-diagonal of all G DxD group
    # covariances at once; that structure is closed under matmul, hence one F-wide
    # Newton-Schulz whitens every group simultaneously.
    mask = mask_ref[...]
    cov = gram * mask

    # Per-column group trace -> per-group normalization so each block's spectrum lies in (0, 1].
    diag_col = jnp.sum(gram * eye, axis=1, keepdims=True)              # [F, 1], gram[i, i]
    trace_cols = jnp.sum(mask * diag_col, axis=0, keepdims=True)       # [1, F], trace of group(j)
    # TODO(synk): like the reference's S.rsqrt(), a rank-deficient / all-dead group produces
    # non-finite values here; no epsilon is added so reference semantics are preserved.
    inv_t = 1.0 / trace_cols
    a = cov * inv_t                                                    # normalized blocks

    # Coupled Newton-Schulz: Y -> A^{1/2}, Z -> A^{-1/2} (A block-diagonal => Y, Z stay so).
    y_m = a
    z_m = eye
    for _ in range(ns_iters):
        t_m = 1.5 * eye - 0.5 * jnp.dot(z_m, y_m, preferred_element_type=jnp.float32)
        y_m = jnp.dot(y_m, t_m, preferred_element_type=jnp.float32)
        z_m = jnp.dot(t_m, z_m, preferred_element_type=jnp.float32)

    # De-normalize with the SAME inv_t so its rounding cancels exactly:
    #   W_g = (cov_g * inv_t)^{-1/2} * sqrt(inv_t) = cov_g^{-1/2}
    w = z_m * jnp.sqrt(inv_t)

    # Whiten every group with one matmul; output is already in original column order.
    o_ref[...] = jnp.dot(xc, w, preferred_element_type=jnp.float32).astype(o_ref.dtype)


def model_forward(feats, params, num_groups, shuffle_idx):
    # TODO(synk): resnet18 backbone is not defined in the provided source; `feats` stands for
    # the backbone's pooled output features [B, in_dim].
    # TODO(synk): BatchNorm1d running_mean/var are not updated (training-mode forward only).
    B = feats.shape[0]
    F = params['w2'].shape[1]
    D = F // num_groups

    # torch.randperm made deterministic via `shuffle_idx`.  Its only effect on the math is which
    # columns share a whitening group; encode that as an [F, F] 0/1 mask so the kernel never
    # gathers and emits the final output directly in original column order.
    group_id = jnp.zeros((F,), jnp.int32).at[shuffle_idx].set(
        jnp.arange(F, dtype=jnp.int32) // D)
    group_mask = (group_id[:, None] == group_id[None, :]).astype(jnp.float32)

    bgb = jnp.stack([params['b1'], params['gamma'], params['beta']], axis=0)  # [3, hidden]

    return pl.pallas_call(
        functools.partial(fused_model_kernel, num_groups=num_groups, ns_iters=NS_ITERS),
        out_shape=jax.ShapeDtypeStruct((B, F), jnp.float32),
        in_specs=[_vmem_spec()] * 6,
        out_specs=_vmem_spec(),
    )(feats, params['w1'], bgb, params['w2'], params['b2'].reshape(1, -1), group_mask)


def reference_forward(feats, params, num_groups, shuffle_idx):
    # Pure-JAX transcription of the PyTorch module (eigh-based), used only to validate the
    # in-kernel Newton-Schulz whitening.
    h = feats @ params['w1'] + params['b1']
    mu = h.mean(0, keepdims=True)
    var = ((h - mu) ** 2).mean(0, keepdims=True)
    h = (h - mu) / jnp.sqrt(var + BN_EPS) * params['gamma'] + params['beta']
    h = jnp.maximum(h, 0.0)
    y = h @ params['w2'] + params['b2']
    F = y.shape[1]
    D = F // num_groups
    xs = y[:, shuffle_idx].reshape(-1, num_groups, D)
    xs = (xs - xs.mean(0, keepdims=True)).transpose(1, 0, 2)            # [G, B, D]
    covs = jnp.einsum('gbi,gbj->gij', xs, xs) / num_groups              # reference's /x.shape[0]
    S, U = jnp.linalg.eigh(covs)
    W = jnp.einsum('gik,gk,gjk->gij', U, 1.0 / jnp.sqrt(S), U)
    xw = jnp.einsum('gbd,gde->gbe', xs, W)                              # [G, B, D]
    flat = xw.transpose(0, 2, 1).reshape(F, -1)                         # [F, B], shuffled rows
    return flat[jnp.argsort(shuffle_idx)].T                             # [B, F]


if __name__ == "__main__":
    B, in_dim, hidden_dim, out_dim, num_groups = 64, 32, 64, 32, 4
    key = jax.random.PRNGKey(0)
    k_x, k_w1, k_b1, k_w2, k_b2, k_perm = jax.random.split(key, 6)

    feats = jax.random.normal(k_x, (B, in_dim), jnp.float32)
    params = {
        'w1': jax.random.normal(k_w1, (in_dim, hidden_dim), jnp.float32) * (in_dim ** -0.5),
        'b1': jax.random.normal(k_b1, (hidden_dim,), jnp.float32) * 0.01,
        'gamma': jnp.ones((hidden_dim,), jnp.float32),   # BatchNorm1d default weight
        'beta': jnp.zeros((hidden_dim,), jnp.float32),   # BatchNorm1d default bias
        'w2': jax.random.normal(k_w2, (hidden_dim, out_dim), jnp.float32) * (hidden_dim ** -0.5),
        'b2': jax.random.normal(k_b2, (out_dim,), jnp.float32) * 0.01,
    }
    # torch.randperm counterpart, made deterministic.
    shuffle_idx = jax.random.permutation(k_perm, out_dim)

    out = jax.block_until_ready(model_forward(feats, params, num_groups, shuffle_idx))
    assert out.shape == (B, out_dim), out.shape
    assert bool(jnp.all(jnp.isfinite(out)))

    # Validate the in-kernel Newton-Schulz whitening against the eigh-based reference.
    ref = jax.block_until_ready(reference_forward(feats, params, num_groups, shuffle_idx))
    max_err = float(jnp.max(jnp.abs(out - ref)))
    assert max_err < 1e-2, max_err
    print("KERNEL_OK")
</pallas_src>

<mosaic_0001>
module attributes {stable_mosaic.version = 11 : i64} {
  func.func @fused_model_kernel(%arg0: memref<64x32xf32, #tpu.memory_space<vmem>>, %arg1: memref<32x64xf32, #tpu.memory_space<vmem>>, %arg2: memref<3x64xf32, #tpu.memory_space<vmem>>, %arg3: memref<64x32xf32, #tpu.memory_space<vmem>>, %arg4: memref<1x32xf32, #tpu.memory_space<vmem>>, %arg5: memref<32x32xf32, #tpu.memory_space<vmem>>, %arg6: memref<64x32xf32, #tpu.memory_space<vmem>>) attributes {dimension_semantics = [], scalar_prefetch = 0 : i64, scratch_operands = 0 : i64, tpu.core_type = #tpu.core_type<tc>} {
    %c0 = arith.constant 0 : index
    %c0_0 = arith.constant 0 : index
    %0 = vector.load %arg0[%c0, %c0_0] : memref<64x32xf32, #tpu.memory_space<vmem>>, vector<64x32xf32>
    %c0_1 = arith.constant 0 : index
    %c0_2 = arith.constant 0 : index
    %1 = vector.load %arg1[%c0_1, %c0_2] : memref<32x64xf32, #tpu.memory_space<vmem>>, vector<32x64xf32>
    %cst = arith.constant dense<0.000000e+00> : vector<64x64xf32>
    %2 = tpu.matmul %0, %1, %cst {dimension_numbers = #tpu.dot_dimension_numbers<[1], [0], [0], [1], [0, 0, 1, 1], [], []>} : vector<64x32xf32>, vector<32x64xf32>, vector<64x64xf32> -> vector<64x64xf32>
    %c0_3 = arith.constant 0 : index
    %c0_4 = arith.constant 0 : index
    %3 = vector.load %arg2[%c0_3, %c0_4] : memref<3x64xf32, #tpu.memory_space<vmem>>, vector<1x64xf32>
    %4 = vector.broadcast %3 : vector<1x64xf32> to vector<64x64xf32>
    %5 = arith.addf %2, %4 : vector<64x64xf32>
    %cst_5 = arith.constant dense<0.000000e+00> : vector<64xf32>
    %6 = vector.multi_reduction <add>, %5, %cst_5 [0] : vector<64x64xf32> to vector<64xf32>
    %7 = vector.shape_cast %6 : vector<64xf32> to vector<1x64xf32>
    %cst_6 = arith.constant 6.400000e+01 : f32
    %8 = vector.broadcast %cst_6 : f32 to vector<1x64xf32>
    %9 = arith.divf %7, %8 : vector<1x64xf32>
    %10 = vector.broadcast %9 : vector<1x64xf32> to vector<64x64xf32>
    %11 = arith.subf %5, %10 : vector<64x64xf32>
    %12 = vector.broadcast %9 : vector<1x64xf32> to vector<64x64xf32>
    %13 = arith.subf %5, %12 : vector<64x64xf32>
    %14 = arith.mulf %11, %13 : vector<64x64xf32>
    %cst_7 = arith.constant dense<0.000000e+00> : vector<64xf32>
    %15 = vector.multi_reduction <add>, %14, %cst_7 [0] : vector<64x64xf32> to vector<64xf32>
    %16 = vector.shape_cast %15 : vector<64xf32> to vector<1x64xf32>
    %cst_8 = arith.constant 6.400000e+01 : f32
    %17 = vector.broadcast %cst_8 : f32 to vector<1x64xf32>
    %18 = arith.divf %16, %17 : vector<1x64xf32>
    %19 = vector.broadcast %9 : vector<1x64xf32> to vector<64x64xf32>
    %20 = arith.subf %5, %19 : vector<64x64xf32>
    %cst_9 = arith.constant 9.99999974E-6 : f32
    %21 = vector.broadcast %cst_9 : f32 to vector<1x64xf32>
    %22 = arith.addf %18, %21 : vector<1x64xf32>
    %23 = math.rsqrt %22 : vector<1x64xf32>
    %24 = vector.broadcast %23 : vector<1x64xf32> to vector<64x64xf32>
    %25 = arith.mulf %20, %24 : vector<64x64xf32>
    %c1 = arith.constant 1 : index
    %c0_10 = arith.constant 0 : index
    %26 = vector.load %arg2[%c1, %c0_10] : memref<3x64xf32, #tpu.memory_space<vmem>>, vector<1x64xf32>
    %27 = vector.broadcast %26 : vector<1x64xf32> to vector<64x64xf32>
    %28 = arith.mulf %25, %27 : vector<64x64xf32>
    %c2 = arith.constant 2 : index
    %c0_11 = arith.constant 0 : index
    %29 = vector.load %arg2[%c2, %c0_11] : memref<3x64xf32, #tpu.memory_space<vmem>>, vector<1x64xf32>
    %30 = vector.broadcast %29 : vector<1x64xf32> to vector<64x64xf32>
    %31 = arith.addf %28, %30 : vector<64x64xf32>
    %cst_12 = arith.constant 0.000000e+00 : f32
    %32 = vector.broadcast %cst_12 : f32 to vector<64x64xf32>
    %33 = arith.maximumf %31, %32 : vector<64x64xf32>
    %c0_13 = arith.constant 0 : index
    %c0_14 = arith.constant 0 : index
    %34 = vector.load %arg3[%c0_13, %c0_14] : memref<64x32xf32, #tpu.memory_space<vmem>>, vector<64x32xf32>
    %cst_15 = arith.constant dense<0.000000e+00> : vector<64x32xf32>
    %35 = tpu.matmul %33, %34, %cst_15 {dimension_numbers = #tpu.dot_dimension_numbers<[1], [0], [0], [1], [0, 0, 1, 1], [], []>} : vector<64x64xf32>, vector<64x32xf32>, vector<64x32xf32> -> vector<64x32xf32>
    %c0_16 = arith.constant 0 : index
    %c0_17 = arith.constant 0 : index
    %36 = vector.load %arg4[%c0_16, %c0_17] : memref<1x32xf32, #tpu.memory_space<vmem>>, vector<1x32xf32>
    %37 = vector.broadcast %36 : vector<1x32xf32> to vector<64x32xf32>
    %38 = arith.addf %35, %37 : vector<64x32xf32>
    %cst_18 = arith.constant dense<0.000000e+00> : vector<32xf32>
    %39 = vector.multi_reduction <add>, %38, %cst_18 [0] : vector<64x32xf32> to vector<32xf32>
    %40 = vector.shape_cast %39 : vector<32xf32> to vector<1x32xf32>
    %cst_19 = arith.constant 6.400000e+01 : f32
    %41 = vector.broadcast %cst_19 : f32 to vector<1x32xf32>
    %42 = arith.divf %40, %41 : vector<1x32xf32>
    %43 = vector.broadcast %42 : vector<1x32xf32> to vector<64x32xf32>
    %44 = arith.subf %38, %43 : vector<64x32xf32>
    %cst_20 = arith.constant dense<0.000000e+00> : vector<32x32xf32>
    %45 = tpu.matmul %44, %44, %cst_20 {dimension_numbers = #tpu.dot_dimension_numbers<[0], [0], [1], [1], [0, 1, 1, 1], [], []>} : vector<64x32xf32>, vector<64x32xf32>, vector<32x32xf32> -> vector<32x32xf32>
    %cst_21 = arith.constant 2.500000e-01 : f32
    %46 = vector.broadcast %cst_21 : f32 to vector<32x32xf32>
    %47 = arith.mulf %45, %46 : vector<32x32xf32>
    %48 = tpu.iota {dimensions = array<i32: 0>} : vector<32x32xi32>
    %49 = tpu.iota {dimensions = array<i32: 1>} : vector<32x32xi32>
    %50 = arith.cmpi eq, %48, %49 : vector<32x32xi32>
    %51 = arith.extui %50 : vector<32x32xi1> to vector<32x32xi32>
    %52 = arith.sitofp %51 : vector<32x32xi32> to vector<32x32xf32>
    %c0_22 = arith.constant 0 : index
    %c0_23 = arith.constant 0 : index
    %53 = vector.load %arg5[%c0_22, %c0_23] : memref<32x32xf32, #tpu.memory_space<vmem>>, vector<32x32xf32>
    %54 = arith.mulf %47, %53 : vector<32x32xf32>
    %55 = arith.mulf %47, %52 : vector<32x32xf32>
    %cst_24 = arith.constant dense<0.000000e+00> : vector<32xf32>
    %56 = vector.multi_reduction <add>, %55, %cst_24 [1] : vector<32x32xf32> to vector<32xf32>
    %57 = vector.shape_cast %56 : vector<32xf32> to vector<32x1xf32>
    %58 = vector.broadcast %57 : vector<32x1xf32> to vector<32x32xf32>
    %59 = arith.mulf %53, %58 : vector<32x32xf32>
    %cst_25 = arith.constant dense<0.000000e+00> : vector<32xf32>
    %60 = vector.multi_reduction <add>, %59, %cst_25 [0] : vector<32x32xf32> to vector<32xf32>
    %61 = vector.shape_cast %60 : vector<32xf32> to vector<1x32xf32>
    %cst_26 = arith.constant 1.000000e+00 : f32
    %62 = vector.broadcast %cst_26 : f32 to vector<1x32xf32>
    %63 = arith.divf %62, %61 : vector<1x32xf32>
    %64 = vector.broadcast %63 : vector<1x32xf32> to vector<32x32xf32>
    %65 = arith.mulf %54, %64 : vector<32x32xf32>
    %cst_27 = arith.constant 1.500000e+00 : f32
    %66 = vector.broadcast %cst_27 : f32 to vector<32x32xf32>
    %67 = arith.mulf %66, %52 : vector<32x32xf32>
    %cst_28 = arith.constant dense<0.000000e+00> : vector<32x32xf32>
    %68 = tpu.matmul %52, %65, %cst_28 {dimension_numbers = #tpu.dot_dimension_numbers<[1], [0], [0], [1], [0, 0, 1, 1], [], []>} : vector<32x32xf32>, vector<32x32xf32>, vector<32x32xf32> -> vector<32x32xf32>
    %cst_29 = arith.constant 5.000000e-01 : f32
    %69 = vector.broadcast %cst_29 : f32 to vector<32x32xf32>
    %70 = arith.mulf %69, %68 : vector<32x32xf32>
    %71 = arith.subf %67, %70 : vector<32x32xf32>
    %cst_30 = arith.constant dense<0.000000e+00> : vector<32x32xf32>
    %72 = tpu.matmul %65, %71, %cst_30 {dimension_numbers = #tpu.dot_dimension_numbers<[1], [0], [0], [1], [0, 0, 1, 1], [], []>} : vector<32x32xf32>, vector<32x32xf32>, vector<32x32xf32> -> vector<32x32xf32>
    %cst_31 = arith.constant dense<0.000000e+00> : vector<32x32xf32>
    %73 = tpu.matmul %71, %52, %cst_31 {dimension_numbers = #tpu.dot_dimension_numbers<[1], [0], [0], [1], [0, 0, 1, 1], [], []>} : vector<32x32xf32>, vector<32x32xf32>, vector<32x32xf32> -> vector<32x32xf32>
    %cst_32 = arith.constant 1.500000e+00 : f32
    %74 = vector.broadcast %cst_32 : f32 to vector<32x32xf32>
    %75 = arith.mulf %74, %52 : vector<32x32xf32>
    %cst_33 = arith.constant dense<0.000000e+00> : vector<32x32xf32>
    %76 = tpu.matmul %73, %72, %cst_33 {dimension_numbers = #tpu.dot_dimension_numbers<[1], [0], [0], [1], [0, 0, 1, 1], [], []>} : vector<32x32xf32>, vector<32x32xf32>, vector<32x32xf32> -> vector<32x32xf32>
    %cst_34 = arith.constant 5.000000e-01 : f32
    %77 = vector.broadcast %cst_34 : f32 to vector<32x32xf32>
    %78 = arith.mulf %77, %76 : vector<32x32xf32>
    %79 = arith.subf %75, %78 : vector<32x32xf32>
    %cst_35 = arith.constant dense<0.000000e+00> : vector<32x32xf32>
    %80 = tpu.matmul %72, %79, %cst_35 {dimension_numbers = #tpu.dot_dimension_numbers<[1], [0], [0], [1], [0, 0, 1, 1], [], []>} : vector<32x32xf32>, vector<32x32xf32>, vector<32x32xf32> -> vector<32x32xf32>
    %cst_36 = arith.constant dense<0.000000e+00> : vector<32x32xf32>
    %81 = tpu.matmul %79, %73, %cst_36 {dimension_numbers = #tpu.dot_dimension_numbers<[1], [0], [0], [1], [0, 0, 1, 1], [], []>} : vector<32x32xf32>, vector<32x32xf32>, vector<32x32xf32> -> vector<32x32xf32>
    %cst_37 = arith.constant 1.500000e+00 : f32
    %82 = vector.broadcast %cst_37 : f32 to vector<32x32xf32>
    %83 = arith.mulf %82, %52 : vector<32x32xf32>
    %cst_38 = arith.constant dense<0.000000e+00> : vector<32x32xf32>
    %84 = tpu.matmul %81, %80, %cst_38 {dimension_numbers = #tpu.dot_dimension_numbers<[1], [0], [0], [1], [0, 0, 1, 1], [], []>} : vector<32x32xf32>, vector<32x32xf32>, vector<32x32xf32> -> vector<32x32xf32>
    %cst_39 = arith.constant 5.000000e-01 : f32
    %85 = vector.broadcast %cst_39 : f32 to vector<32x32xf32>
    %86 = arith.mulf %85, %84 : vector<32x32xf32>
    %87 = arith.subf %83, %86 : vector<32x32xf32>
    %cst_40 = arith.constant dense<0.000000e+00> : vector<32x32xf32>
    %88 = tpu.matmul %80, %87, %cst_40 {dimension_numbers = #tpu.dot_dimension_numbers<[1], [0], [0], [1], [0, 0, 1, 1], [], []>} : vector<32x32xf32>, vector<32x32xf32>, vector<32x32xf32> -> vector<32x32xf32>
    %cst_41 = arith.constant dense<0.000000e+00> : vector<32x32xf32>
    %89 = tpu.matmul %87, %81, %cst_41 {dimension_numbers = #tpu.dot_dimension_numbers<[1], [0], [0], [1], [0, 0, 1, 1], [], []>} : vector<32x32xf32>, vector<32x32xf32>, vector<32x32xf32> -> vector<32x32xf32>
    %cst_42 = arith.constant 1.500000e+00 : f32
    %90 = vector.broadcast %cst_42 : f32 to vector<32x32xf32>
    %91 = arith.mulf %90, %52 : vector<32x32xf32>
    %cst_43 = arith.constant dense<0.000000e+00> : vector<32x32xf32>
    %92 = tpu.matmul %89, %88, %cst_43 {dimension_numbers = #tpu.dot_dimension_numbers<[1], [0], [0], [1], [0, 0, 1, 1], [], []>} : vector<32x32xf32>, vector<32x32xf32>, vector<32x32xf32> -> vector<32x32xf32>
    %cst_44 = arith.constant 5.000000e-01 : f32
    %93 = vector.broadcast %cst_44 : f32 to vector<32x32xf32>
    %94 = arith.mulf %93, %92 : vector<32x32xf32>
    %95 = arith.subf %91, %94 : vector<32x32xf32>
    %cst_45 = arith.constant dense<0.000000e+00> : vector<32x32xf32>
    %96 = tpu.matmul %88, %95, %cst_45 {dimension_numbers = #tpu.dot_dimension_numbers<[1], [0], [0], [1], [0, 0, 1, 1], [], []>} : vector<32x32xf32>, vector<32x32xf32>, vector<32x32xf32> -> vector<32x32xf32>
    %cst_46 = arith.constant dense<0.000000e+00> : vector<32x32xf32>
    %97 = tpu.matmul %95, %89, %cst_46 {dimension_numbers = #tpu.dot_dimension_numbers<[1], [0], [0], [1], [0, 0, 1, 1], [], []>} : vector<32x32xf32>, vector<32x32xf32>, vector<32x32xf32> -> vector<32x32xf32>
    %cst_47 = arith.constant 1.500000e+00 : f32
    %98 = vector.broadcast %cst_47 : f32 to vector<32x32xf32>
    %99 = arith.mulf %98, %52 : vector<32x32xf32>
    %cst_48 = arith.constant dense<0.000000e+00> : vector<32x32xf32>
    %100 = tpu.matmul %97, %96, %cst_48 {dimension_numbers = #tpu.dot_dimension_numbers<[1], [0], [0], [1], [0, 0, 1, 1], [], []>} : vector<32x32xf32>, vector<32x32xf32>, vector<32x32xf32> -> vector<32x32xf32>
    %cst_49 = arith.constant 5.000000e-01 : f32
    %101 = vector.broadcast %cst_49 : f32 to vector<32x32xf32>
    %102 = arith.mulf %101, %100 : vector<32x32xf32>
    %103 = arith.subf %99, %102 : vector<32x32xf32>
    %cst_50 = arith.constant dense<0.000000e+00> : vector<32x32xf32>
    %104 = tpu.matmul %96, %103, %cst_50 {dimension_numbers = #tpu.dot_dimension_numbers<[1], [0], [0], [1], [0, 0, 1, 1], [], []>} : vector<32x32xf32>, vector<32x32xf32>, vector<32x32xf32> -> vector<32x32xf32>
    %cst_51 = arith.constant dense<0.000000e+00> : vector<32x32xf32>
    %105 = tpu.matmul %103, %97, %cst_51 {dimension_numbers = #tpu.dot_dimension_numbers<[1], [0], [0], [1], [0, 0, 1, 1], [], []>} : vector<32x32xf32>, vector<32x32xf32>, vector<32x32xf32> -> vector<32x32xf32>
    %cst_52 = arith.constant 1.500000e+00 : f32
    %106 = vector.broadcast %cst_52 : f32 to vector<32x32xf32>
    %107 = arith.mulf %106, %52 : vector<32x32xf32>
    %cst_53 = arith.constant dense<0.000000e+00> : vector<32x32xf32>
    %108 = tpu.matmul %105, %104, %cst_53 {dimension_numbers = #tpu.dot_dimension_numbers<[1], [0], [0], [1], [0, 0, 1, 1], [], []>} : vector<32x32xf32>, vector<32x32xf32>, vector<32x32xf32> -> vector<32x32xf32>
    %cst_54 = arith.constant 5.000000e-01 : f32
    %109 = vector.broadcast %cst_54 : f32 to vector<32x32xf32>
    %110 = arith.mulf %109, %108 : vector<32x32xf32>
    %111 = arith.subf %107, %110 : vector<32x32xf32>
    %cst_55 = arith.constant dense<0.000000e+00> : vector<32x32xf32>
    %112 = tpu.matmul %104, %111, %cst_55 {dimension_numbers = #tpu.dot_dimension_numbers<[1], [0], [0], [1], [0, 0, 1, 1], [], []>} : vector<32x32xf32>, vector<32x32xf32>, vector<32x32xf32> -> vector<32x32xf32>
    %cst_56 = arith.constant dense<0.000000e+00> : vector<32x32xf32>
    %113 = tpu.matmul %111, %105, %cst_56 {dimension_numbers = #tpu.dot_dimension_numbers<[1], [0], [0], [1], [0, 0, 1, 1], [], []>} : vector<32x32xf32>, vector<32x32xf32>, vector<32x32xf32> -> vector<32x32xf32>
    %cst_57 = arith.constant 1.500000e+00 : f32
    %114 = vector.broadcast %cst_57 : f32 to vector<32x32xf32>
    %115 = arith.mulf %114, %52 : vector<32x32xf32>
    %cst_58 = arith.constant dense<0.000000e+00> : vector<32x32xf32>
    %116 = tpu.matmul %113, %112, %cst_58 {dimension_numbers = #tpu.dot_dimension_numbers<[1], [0], [0], [1], [0, 0, 1, 1], [], []>} : vector<32x32xf32>, vector<32x32xf32>, vector<32x32xf32> -> vector<32x32xf32>
    %cst_59 = arith.constant 5.000000e-01 : f32
    %117 = vector.broadcast %cst_59 : f32 to vector<32x32xf32>
    %118 = arith.mulf %117, %116 : vector<32x32xf32>
    %119 = arith.subf %115, %118 : vector<32x32xf32>
    %cst_60 = arith.constant dense<0.000000e+00> : vector<32x32xf32>
    %120 = tpu.matmul %112, %119, %cst_60 {dimension_numbers = #tpu.dot_dimension_numbers<[1], [0], [0], [1], [0, 0, 1, 1], [], []>} : vector<32x32xf32>, vector<32x32xf32>, vector<32x32xf32> -> vector<32x32xf32>
    %cst_61 = arith.constant dense<0.000000e+00> : vector<32x32xf32>
    %121 = tpu.matmul %119, %113, %cst_61 {dimension_numbers = #tpu.dot_dimension_numbers<[1], [0], [0], [1], [0, 0, 1, 1], [], []>} : vector<32x32xf32>, vector<32x32xf32>, vector<32x32xf32> -> vector<32x32xf32>
    %cst_62 = arith.constant 1.500000e+00 : f32
    %122 = vector.broadcast %cst_62 : f32 to vector<32x32xf32>
    %123 = arith.mulf %122, %52 : vector<32x32xf32>
    %cst_63 = arith.constant dense<0.000000e+00> : vector<32x32xf32>
    %124 = tpu.matmul %121, %120, %cst_63 {dimension_numbers = #tpu.dot_dimension_numbers<[1], [0], [0], [1], [0, 0, 1, 1], [], []>} : vector<32x32xf32>, vector<32x32xf32>, vector<32x32xf32> -> vector<32x32xf32>
    %cst_64 = arith.constant 5.000000e-01 : f32
    %125 = vector.broadcast %cst_64 : f32 to vector<32x32xf32>
    %126 = arith.mulf %125, %124 : vector<32x32xf32>
    %127 = arith.subf %123, %126 : vector<32x32xf32>
    %cst_65 = arith.constant dense<0.000000e+00> : vector<32x32xf32>
    %128 = tpu.matmul %120, %127, %cst_65 {dimension_numbers = #tpu.dot_dimension_numbers<[1], [0], [0], [1], [0, 0, 1, 1], [], []>} : vector<32x32xf32>, vector<32x32xf32>, vector<32x32xf32> -> vector<32x32xf32>
    %cst_66 = arith.constant dense<0.000000e+00> : vector<32x32xf32>
    %129 = tpu.matmul %127, %121, %cst_66 {dimension_numbers = #tpu.dot_dimension_numbers<[1], [0], [0], [1], [0, 0, 1, 1], [], []>} : vector<32x32xf32>, vector<32x32xf32>, vector<32x32xf32> -> vector<32x32xf32>
    %cst_67 = arith.constant 1.500000e+00 : f32
    %130 = vector.broadcast %cst_67 : f32 to vector<32x32xf32>
    %131 = arith.mulf %130, %52 : vector<32x32xf32>
    %cst_68 = arith.constant dense<0.000000e+00> : vector<32x32xf32>
    %132 = tpu.matmul %129, %128, %cst_68 {dimension_numbers = #tpu.dot_dimension_numbers<[1], [0], [0], [1], [0, 0, 1, 1], [], []>} : vector<32x32xf32>, vector<32x32xf32>, vector<32x32xf32> -> vector<32x32xf32>
    %cst_69 = arith.constant 5.000000e-01 : f32
    %133 = vector.broadcast %cst_69 : f32 to vector<32x32xf32>
    %134 = arith.mulf %133, %132 : vector<32x32xf32>
    %135 = arith.subf %131, %134 : vector<32x32xf32>
    %cst_70 = arith.constant dense<0.000000e+00> : vector<32x32xf32>
    %136 = tpu.matmul %128, %135, %cst_70 {dimension_numbers = #tpu.dot_dimension_numbers<[1], [0], [0], [1], [0, 0, 1, 1], [], []>} : vector<32x32xf32>, vector<32x32xf32>, vector<32x32xf32> -> vector<32x32xf32>
    %cst_71 = arith.constant dense<0.000000e+00> : vector<32x32xf32>
    %137 = tpu.matmul %135, %129, %cst_71 {dimension_numbers = #tpu.dot_dimension_numbers<[1], [0], [0], [1], [0, 0, 1, 1], [], []>} : vector<32x32xf32>, vector<32x32xf32>, vector<32x32xf32> -> vector<32x32xf32>
    %cst_72 = arith.constant 1.500000e+00 : f32
    %138 = vector.broadcast %cst_72 : f32 to vector<32x32xf32>
    %139 = arith.mulf %138, %52 : vector<32x32xf32>
    %cst_73 = arith.constant dense<0.000000e+00> : vector<32x32xf32>
    %140 = tpu.matmul %137, %136, %cst_73 {dimension_numbers = #tpu.dot_dimension_numbers<[1], [0], [0], [1], [0, 0, 1, 1], [], []>} : vector<32x32xf32>, vector<32x32xf32>, vector<32x32xf32> -> vector<32x32xf32>
    %cst_74 = arith.constant 5.000000e-01 : f32
    %141 = vector.broadcast %cst_74 : f32 to vector<32x32xf32>
    %142 = arith.mulf %141, %140 : vector<32x32xf32>
    %143 = arith.subf %139, %142 : vector<32x32xf32>
    %cst_75 = arith.constant dense<0.000000e+00> : vector<32x32xf32>
    %144 = tpu.matmul %136, %143, %cst_75 {dimension_numbers = #tpu.dot_dimension_numbers<[1], [0], [0], [1], [0, 0, 1, 1], [], []>} : vector<32x32xf32>, vector<32x32xf32>, vector<32x32xf32> -> vector<32x32xf32>
    %cst_76 = arith.constant dense<0.000000e+00> : vector<32x32xf32>
    %145 = tpu.matmul %143, %137, %cst_76 {dimension_numbers = #tpu.dot_dimension_numbers<[1], [0], [0], [1], [0, 0, 1, 1], [], []>} : vector<32x32xf32>, vector<32x32xf32>, vector<32x32xf32> -> vector<32x32xf32>
    %cst_77 = arith.constant 1.500000e+00 : f32
    %146 = vector.broadcast %cst_77 : f32 to vector<32x32xf32>
    %147 = arith.mulf %146, %52 : vector<32x32xf32>
    %cst_78 = arith.constant dense<0.000000e+00> : vector<32x32xf32>
    %148 = tpu.matmul %145, %144, %cst_78 {dimension_numbers = #tpu.dot_dimension_numbers<[1], [0], [0], [1], [0, 0, 1, 1], [], []>} : vector<32x32xf32>, vector<32x32xf32>, vector<32x32xf32> -> vector<32x32xf32>
    %cst_79 = arith.constant 5.000000e-01 : f32
    %149 = vector.broadcast %cst_79 : f32 to vector<32x32xf32>
    %150 = arith.mulf %149, %148 : vector<32x32xf32>
    %151 = arith.subf %147, %150 : vector<32x32xf32>
    %cst_80 = arith.constant dense<0.000000e+00> : vector<32x32xf32>
    %152 = tpu.matmul %144, %151, %cst_80 {dimension_numbers = #tpu.dot_dimension_numbers<[1], [0], [0], [1], [0, 0, 1, 1], [], []>} : vector<32x32xf32>, vector<32x32xf32>, vector<32x32xf32> -> vector<32x32xf32>
    %cst_81 = arith.constant dense<0.000000e+00> : vector<32x32xf32>
    %153 = tpu.matmul %151, %145, %cst_81 {dimension_numbers = #tpu.dot_dimension_numbers<[1], [0], [0], [1], [0, 0, 1, 1], [], []>} : vector<32x32xf32>, vector<32x32xf32>, vector<32x32xf32> -> vector<32x32xf32>
    %cst_82 = arith.constant 1.500000e+00 : f32
    %154 = vector.broadcast %cst_82 : f32 to vector<32x32xf32>
    %155 = arith.mulf %154, %52 : vector<32x32xf32>
    %cst_83 = arith.constant dense<0.000000e+00> : vector<32x32xf32>
    %156 = tpu.matmul %153, %152, %cst_83 {dimension_numbers = #tpu.dot_dimension_numbers<[1], [0], [0], [1], [0, 0, 1, 1], [], []>} : vector<32x32xf32>, vector<32x32xf32>, vector<32x32xf32> -> vector<32x32xf32>
    %cst_84 = arith.constant 5.000000e-01 : f32
    %157 = vector.broadcast %cst_84 : f32 to vector<32x32xf32>
    %158 = arith.mulf %157, %156 : vector<32x32xf32>
    %159 = arith.subf %155, %158 : vector<32x32xf32>
    %cst_85 = arith.constant dense<0.000000e+00> : vector<32x32xf32>
    %160 = tpu.matmul %152, %159, %cst_85 {dimension_numbers = #tpu.dot_dimension_numbers<[1], [0], [0], [1], [0, 0, 1, 1], [], []>} : vector<32x32xf32>, vector<32x32xf32>, vector<32x32xf32> -> vector<32x32xf32>
    %cst_86 = arith.constant dense<0.000000e+00> : vector<32x32xf32>
    %161 = tpu.matmul %159, %153, %cst_86 {dimension_numbers = #tpu.dot_dimension_numbers<[1], [0], [0], [1], [0, 0, 1, 1], [], []>} : vector<32x32xf32>, vector<32x32xf32>, vector<32x32xf32> -> vector<32x32xf32>
    %cst_87 = arith.constant 1.500000e+00 : f32
    %162 = vector.broadcast %cst_87 : f32 to vector<32x32xf32>
    %163 = arith.mulf %162, %52 : vector<32x32xf32>
    %cst_88 = arith.constant dense<0.000000e+00> : vector<32x32xf32>
    %164 = tpu.matmul %161, %160, %cst_88 {dimension_numbers = #tpu.dot_dimension_numbers<[1], [0], [0], [1], [0, 0, 1, 1], [], []>} : vector<32x32xf32>, vector<32x32xf32>, vector<32x32xf32> -> vector<32x32xf32>
    %cst_89 = arith.constant 5.000000e-01 : f32
    %165 = vector.broadcast %cst_89 : f32 to vector<32x32xf32>
    %166 = arith.mulf %165, %164 : vector<32x32xf32>
    %167 = arith.subf %163, %166 : vector<32x32xf32>
    %cst_90 = arith.constant dense<0.000000e+00> : vector<32x32xf32>
    %168 = tpu.matmul %160, %167, %cst_90 {dimension_numbers = #tpu.dot_dimension_numbers<[1], [0], [0], [1], [0, 0, 1, 1], [], []>} : vector<32x32xf32>, vector<32x32xf32>, vector<32x32xf32> -> vector<32x32xf32>
    %cst_91 = arith.constant dense<0.000000e+00> : vector<32x32xf32>
    %169 = tpu.matmul %167, %161, %cst_91 {dimension_numbers = #tpu.dot_dimension_numbers<[1], [0], [0], [1], [0, 0, 1, 1], [], []>} : vector<32x32xf32>, vector<32x32xf32>, vector<32x32xf32> -> vector<32x32xf32>
    %cst_92 = arith.constant 1.500000e+00 : f32
    %170 = vector.broadcast %cst_92 : f32 to vector<32x32xf32>
    %171 = arith.mulf %170, %52 : vector<32x32xf32>
    %cst_93 = arith.constant dense<0.000000e+00> : vector<32x32xf32>
    %172 = tpu.matmul %169, %168, %cst_93 {dimension_numbers = #tpu.dot_dimension_numbers<[1], [0], [0], [1], [0, 0, 1, 1], [], []>} : vector<32x32xf32>, vector<32x32xf32>, vector<32x32xf32> -> vector<32x32xf32>
    %cst_94 = arith.constant 5.000000e-01 : f32
    %173 = vector.broadcast %cst_94 : f32 to vector<32x32xf32>
    %174 = arith.mulf %173, %172 : vector<32x32xf32>
    %175 = arith.subf %171, %174 : vector<32x32xf32>
    %cst_95 = arith.constant dense<0.000000e+00> : vector<32x32xf32>
    %176 = tpu.matmul %175, %169, %cst_95 {dimension_numbers = #tpu.dot_dimension_numbers<[1], [0], [0], [1], [0, 0, 1, 1], [], []>} : vector<32x32xf32>, vector<32x32xf32>, vector<32x32xf32> -> vector<32x32xf32>
    %177 = math.sqrt %63 : vector<1x32xf32>
    %178 = vector.broadcast %177 : vector<1x32xf32> to vector<32x32xf32>
    %179 = arith.mulf %176, %178 : vector<32x32xf32>
    %cst_96 = arith.constant dense<0.000000e+00> : vector<64x32xf32>
    %180 = tpu.matmul %44, %179, %cst_96 {dimension_numbers = #tpu.dot_dimension_numbers<[1], [0], [0], [1], [0, 0, 1, 1], [], []>} : vector<64x32xf32>, vector<32x32xf32>, vector<64x32xf32> -> vector<64x32xf32>
    %c0_97 = arith.constant 0 : index
    %c0_98 = arith.constant 0 : index
    %181 = vector.load %arg6[%c0_97, %c0_98] : memref<64x32xf32, #tpu.memory_space<vmem>>, vector<64x32xf32>
    tpu.vector_store %arg6[%c0_97, %c0_98], %180 {strides = array<i32>} : memref<64x32xf32, #tpu.memory_space<vmem>>, vector<64x32xf32>,
    return
  }
}

</mosaic_0001>

<bundles_post_ra>
// kernel: tpu_custom_call.1
= control target key start
LH: loop header
LB: loop body
LE: loop exit
PB: predicated region body
PF: predicated region fallthrough
CT: control target
= control target key end

     0   :  { %vm40_vm0 = vcmask 261120   ;;  %vm170_vm1 = vcmask 523264   ;;  %s7088_s1 = inlined_call_operand.vmem [shape: f32[32,64], index: 1, kind: input, shape index: {}]   ;;  %s7089_s0 = inlined_call_operand.vmem [shape: f32[64,32], index: 0, kind: input, shape index: {}]   ;;  %s7090_s3 = inlined_call_operand.vmem [shape: f32[64,32], index: 3, kind: input, shape index: {}]   ;;  %s7091_s2 = inlined_call_operand.vmem [shape: f32[3,64], index: 2, kind: input, shape index: {}]   ;;  %s7092_s4 = inlined_call_operand.vmem [shape: f32[1,32], index: 4, kind: input, shape index: {}]   ;;  %s7093_s5 = inlined_call_operand.vmem [shape: f32[32,32], index: 5, kind: input, shape index: {}]   ;;  %s7094_s6 = inlined_call_operand.vmem [shape: f32[64,32], index: 6, kind: output, shape index: {}]  }
   0x1   :  { %v31_v0 = vld [vmem:[%s7088_s1] sm:$0xff]  ;;  %v32_v1 = vld [vmem:[%s7088_s1 + $0x8] sm:$0xff]  ;;  %v33_v2 = vld [vmem:[%s7088_s1 + $0x10] sm:$0xff] }
   0x2   :  { %v6142_v3 = vpack.c.bf16 %v32_v1, %v31_v0  ;;  %v34_v4 = vld [vmem:[%s7088_s1 + $0x18] sm:$0xff]  ;;  %v23_v5 = vld [vmem:[%s7089_s0] sm:$0xff]  ;;  %v24_v7 = vld [vmem:[%s7089_s0 + $0x8] sm:$0xff] }
   0x3   :  { %v6146_v6 = vpack.c.bf16 %v34_v4, %v33_v2  ;;  %5486 = vmatprep.mubr.msk.f32.mxu0 %vm40_vm0, %v23_v5  ;;  %v25_v8 = vld [vmem:[%s7089_s0 + $0x10] sm:$0xff]  ;;  %v26_v9 = vld [vmem:[%s7089_s0 + $0x18] sm:$0xff]  ;;  %v27_v10 = vld [vmem:[%s7089_s0 + $0x20] sm:$0xff] }
   0x4   :  { %6143 = vmatprep.subr.bf16.mxu0 %v6142_v3  ;;  %v28_v11 = vld [vmem:[%s7089_s0 + $0x28] sm:$0xff]  ;;  %v29_v12 = vld [vmem:[%s7089_s0 + $0x30] sm:$0xff]  ;;  %v30_v13 = vld [vmem:[%s7089_s0 + $0x38] sm:$0xff] }
   0x5   :  { %6145 = vmatpush3.bf16.msra.mxu0 %v6142_v3  ;;  %v276_v14 = vld [vmem:[%s7090_s3] sm:$0xff]  ;;  %v277_v15 = vld [vmem:[%s7090_s3 + $0x8] sm:$0xff]  ;;  %v278_v17 = vld [vmem:[%s7090_s3 + $0x10] sm:$0xff] }
   0x6   :  { %6147 = vmatprep.subr.bf16.mxu0 %v6146_v6  ;;  %v6150_v16 = vpack.c.bf16 %v277_v15, %v276_v14  ;;  %v279_v18 = vld [vmem:[%s7090_s3 + $0x18] sm:$0xff]  ;;  %v280_v20 = vld [vmem:[%s7090_s3 + $0x20] sm:$0xff]  ;;  %v281_v21 = vld [vmem:[%s7090_s3 + $0x28] sm:$0xff] }
   0x7   :  { %v6154_v19 = vpack.c.bf16 %v279_v18, %v278_v17  ;;  %v6158_v22 = vpack.c.bf16 %v281_v21, %v280_v20  ;;  %v282_v23 = vld [vmem:[%s7090_s3 + $0x30] sm:$0xff]  ;;  %v283_v24 = vld [vmem:[%s7090_s3 + $0x38] sm:$0xff]  ;;  %v4894_v26 = vld [vmem:[%s7091_s2] ss:$0 sm:$0xff] }
   0x8   :  { %6151 = vmatprep.subr.bf16.mxu1 %v6150_v16  ;;  %v6162_v25 = vpack.c.bf16 %v283_v24, %v282_v23 }
   0x9   :  { %6149 = vmatpush3.bf16.msra.mxu0 %v6146_v6  ;;  %6153 = vmatpush3.bf16.msra.mxu1 %v6150_v16 }
   0xa   :  { %6155 = vmatprep.subr.bf16.mxu1 %v6154_v19 }
   0xc   :  { %5487 = vmatmul.mubr.msk.f32.vlgmr.msra.gmra.mrb[0].mxu0 %vm40_vm0, %v24_v7 }
   0xd   :  { %5489 = vmatprep.mubr.msk.f32.mxu0 %vm40_vm0, %v25_v8  ;;  %6157 = vmatpush3.bf16.msra.mxu1 %v6154_v19 }
   0xe   :  { %6159 = vmatprep.subr.bf16.mxu1 %v6158_v22 }
  0x10   :  { %5490 = vmatmul.mubr.msk.f32.gmra.mrb[2].mxu0 %vm40_vm0, %v26_v9 }
  0x11   :  { %5492 = vmatprep.mubr.msk.f32.mxu0 %vm40_vm0, %v27_v10  ;;  %6161 = vmatpush3.bf16.msra.mxu1 %v6158_v22 }
  0x12   :  { %6163 = vmatprep.subr.bf16.mxu1 %v6162_v25 }
  0x14   :  { %5493 = vmatmul.mubr.msk.f32.gmra.mrb[4].mxu0 %vm40_vm0, %v28_v11 }
  0x15   :  { %5495 = vmatprep.mubr.msk.f32.mxu0 %vm40_vm0, %v29_v12  ;;  %6165 = vmatpush3.bf16.msra.mxu1 %v6162_v25 }
  0x18   :  { %5496 = vmatmul.mubr.msk.f32.gmra.mrb[6].mxu0 %vm40_vm0, %v30_v13 }
  0xdf   :  { %v5488_v27 = vpop.f32.mrb[0].mxu0 }
  0xe0   :  { %v137_v28 = vadd.f32 %v5488_v27, %v4894_v26  ;;  %v131_v29 = vpop.f32.mrb[1].mxu0 }
  0xe1   :  { %v132_v30 = vadd.f32 %v4894_v26, %v131_v29 }
  0xe2   :  { %v172_v31 = vsel %vm170_vm1, %v137_v28, 0.0 }
  0xe3   :  { %v171_v32 = vsel %vm170_vm1, %v132_v30, 0.0  ;;  %v5491_v33 = vpop.f32.mrb[2].mxu0 }
  0xe4   :  { %v173_v34 = vadd.f32 %v172_v31, %v171_v32  ;;  %v141_v35 = vpop.f32.mrb[3].mxu0  ;;  %v147_v36 = vadd.f32 %v5491_v33, %v4894_v26 }
  0xe5   :  { %v142_v37 = vadd.f32 %v4894_v26, %v141_v35 }
  0xe6   :  { %v176_v42 = vsel %vm170_vm1, %v147_v36, 0.0 }
  0xe7   :  { %v174_v38 = vsel %vm170_vm1, %v142_v37, 0.0  ;;  %v5494_v39 = vpop.f32.mrb[4].mxu0 }
  0xe8   :  { %v175_v40 = vadd.f32 %v174_v38, %v173_v34  ;;  %v151_v41 = vpop.f32.mrb[5].mxu0  ;;  %v157_v43 = vadd.f32 %v5494_v39, %v4894_v26 }
  0xe9   :  { %v152_v44 = vadd.f32 %v4894_v26, %v151_v41  ;;  %v4903_v41 = vld [vmem:[%s7091_s2 + $0x1] ss:$0 sm:$0xff] }
  0xea   :  { %v177_v45 = vadd.f32 %v176_v42, %v175_v40  ;;  %v180_v50 = vsel %vm170_vm1, %v157_v43, 0.0 }
  0xeb   :  { %v178_v46 = vsel %vm170_vm1, %v152_v44, 0.0  ;;  %v5497_v47 = vpop.f32.mrb[6].mxu0 }
  0xec   :  { %v179_v48 = vadd.f32 %v178_v46, %v177_v45  ;;  %v161_v49 = vpop.f32.mrb[7].mxu0  ;;  %v167_v51 = vadd.f32 %v5497_v47, %v4894_v26  ;;  %v4904_v46 = vld [vmem:[%s7091_s2 + $0x2] ss:$0 sm:$0xff] }
  0xed   :  { %v162_v52 = vadd.f32 %v4894_v26, %v161_v49 }
  0xee   :  { %v181_v53 = vadd.f32 %v180_v50, %v179_v48  ;;  %v184_v56 = vsel %vm170_vm1, %v167_v51, 0.0 }
  0xef   :  { %v182_v54 = vsel %vm170_vm1, %v162_v52, 0.0 }
  0xf0   :  { %v183_v55 = vadd.f32 %v182_v54, %v181_v53 }
  0xf2   :  { %v185_v57 = vadd.f32 %v184_v56, %v183_v55 }
  0xf4   :  { %v186_v58 = vrot.slane %v185_v57, 4 }
  0xf6   :  { %v187_v59 = vadd.f32 %v186_v58, %v185_v57 }
  0xf8   :  { %v188_v60 = vrot.slane %v187_v59, 2 }
  0xfa   :  { %v189_v61 = vadd.f32 %v188_v60, %v187_v59 }
  0xfc   :  { %v190_v62 = vrot.slane %v189_v61, 1 }
  0xfe   :  { %v191_v63 = vadd.f32 %v190_v62, %v189_v61 }
 0x100   :  { %v193_v0 = vmul.f32 0.015625, %v191_v63 }
 0x102   :  { %v194_v1 = vsub.f32 %v132_v30, %v193_v0  ;;  %v195_v2 = vsub.f32 %v137_v28, %v193_v0  ;;  %v196_v3 = vsub.f32 %v142_v37, %v193_v0  ;;  %v197_v4 = vsub.f32 %v147_v36, %v193_v0 }
 0x103   :  { %v198_v5 = vsub.f32 %v152_v44, %v193_v0  ;;  %v199_v6 = vsub.f32 %v157_v43, %v193_v0  ;;  %v200_v7 = vsub.f32 %v162_v52, %v193_v0  ;;  %v201_v8 = vsub.f32 %v167_v51, %v193_v0 }
 0x104   :  { %v202_v9 = vmul.f32 %v194_v1, %v194_v1  ;;  %v203_v10 = vmul.f32 %v195_v2, %v195_v2  ;;  %v204_v11 = vmul.f32 %v196_v3, %v196_v3  ;;  %v205_v12 = vmul.f32 %v197_v4, %v197_v4 }
 0x105   :  { %v206_v16 = vmul.f32 %v198_v5, %v198_v5  ;;  %v207_v19 = vmul.f32 %v199_v6, %v199_v6  ;;  %v208_v22 = vmul.f32 %v200_v7, %v200_v7  ;;  %v209_v25 = vmul.f32 %v201_v8, %v201_v8 }
 0x106   :  { %v210_v13 = vsel %vm170_vm1, %v202_v9, 0.0  ;;  %v211_v14 = vsel %vm170_vm1, %v203_v10, 0.0  ;;  %v213_v17 = vsel %vm170_vm1, %v204_v11, 0.0  ;;  %v215_v20 = vsel %vm170_vm1, %v205_v12, 0.0  ;;  %v4905_v11 = vld [vmem:[%s7092_s4] ss:$0 sm:$0xff] }
 0x107   :  { %v212_v15 = vadd.f32 %v211_v14, %v210_v13  ;;  %v217_v23 = vsel %vm170_vm1, %v206_v16, 0.0  ;;  %v219_v26 = vsel %vm170_vm1, %v207_v19, 0.0  ;;  %v221_v28 = vsel %vm170_vm1, %v208_v22, 0.0 }
 0x108   :  { %v223_v30 = vsel %vm170_vm1, %v209_v25, 0.0 }
 0x109   :  { %v214_v18 = vadd.f32 %v213_v17, %v212_v15 }
 0x10b   :  { %v216_v21 = vadd.f32 %v215_v20, %v214_v18 }
 0x10d   :  { %v218_v24 = vadd.f32 %v217_v23, %v216_v21 }
 0x10f   :  { %v220_v27 = vadd.f32 %v219_v26, %v218_v24 }
 0x111   :  { %v222_v29 = vadd.f32 %v221_v28, %v220_v27 }
 0x113   :  { %v224_v31 = vadd.f32 %v223_v30, %v222_v29 }
 0x115   :  { %v225_v32 = vrot.slane %v224_v31, 4 }
 0x117   :  { %v226_v33 = vadd.f32 %v225_v32, %v224_v31 }
 0x119   :  { %v227_v34 = vrot.slane %v226_v33, 2 }
 0x11b   :  { %v228_v35 = vadd.f32 %v227_v34, %v226_v33 }
 0x11d   :  { %v229_v36 = vrot.slane %v228_v35, 1 }
 0x11f   :  { %v230_v37 = vadd.f32 %v229_v36, %v228_v35 }
 0x121   :  { %v231_v38 = vmul.f32 0.015625, %v230_v37 }
 0x123   :  { %v232_v39 = vadd.f32 1e-05, %v231_v38 }
 0x125   :  { %6524 = vrsqrt.f32 %v232_v39 }
 0x12f   :  { %v6525_v40 = vpop.eup %6524 }
 0x130   :  { %v240_v42 = vmul.f32 %v6525_v40, %v200_v7  ;;  %v234_v43 = vmul.f32 %v6525_v40, %v194_v1  ;;  %v235_v44 = vmul.f32 %v6525_v40, %v195_v2  ;;  %v236_v45 = vmul.f32 %v6525_v40, %v196_v3 }
 0x131   :  { %v237_v47 = vmul.f32 %v6525_v40, %v197_v4  ;;  %v238_v48 = vmul.f32 %v6525_v40, %v198_v5  ;;  %v239_v49 = vmul.f32 %v6525_v40, %v199_v6  ;;  %v241_v50 = vmul.f32 %v6525_v40, %v201_v8 }
 0x132   :  { %v247_v51 = vmul.f32 %v4903_v41, %v234_v43  ;;  %v248_v52 = vmul.f32 %v4903_v41, %v235_v44  ;;  %v249_v53 = vmul.f32 %v4903_v41, %v236_v45  ;;  %v253_v63 = vmul.f32 %v4903_v41, %v240_v42 }
 0x133   :  { %v250_v54 = vmul.f32 %v4903_v41, %v237_v47  ;;  %v251_v58 = vmul.f32 %v4903_v41, %v238_v48  ;;  %v252_v62 = vmul.f32 %v4903_v41, %v239_v49  ;;  %v254_v4 = vmul.f32 %v4903_v41, %v241_v50 }
 0x134   :  { %v260_v55 = vadd.f32 %v4904_v46, %v247_v51  ;;  %v261_v56 = vadd.f32 %v4904_v46, %v248_v52  ;;  %v262_v57 = vadd.f32 %v4904_v46, %v249_v53  ;;  %v266_v6 = vadd.f32 %v4904_v46, %v253_v63 }
 0x135   :  { %v263_v61 = vadd.f32 %v4904_v46, %v250_v54  ;;  %v264_v1 = vadd.f32 %v4904_v46, %v251_v58  ;;  %v265_v3 = vadd.f32 %v4904_v46, %v252_v62  ;;  %v267_v8 = vadd.f32 %v4904_v46, %v254_v4 }
 0x136   :  { %v268_v59 = vmax.f32 %v260_v55, 0.0  ;;  %v269_v60 = vmax.f32 %v261_v56, 0.0  ;;  %v270_v0 = vmax.f32 %v262_v57, 0.0  ;;  %v274_v9 = vmax.f32 %v266_v6, 0.0 }
 0x137   :  { %v271_v2 = vmax.f32 %v263_v61, 0.0  ;;  %v272_v5 = vmax.f32 %v264_v1, 0.0  ;;  %v273_v7 = vmax.f32 %v265_v3, 0.0  ;;  %v275_v10 = vmax.f32 %v267_v8, 0.0 }
 0x138   :  { %5514 = vmatprep.mubr.msk.f32.mxu1 %vm170_vm1, %v268_v59  ;;  %v6530_v6 = vmov 0.0  }
 0x139   :  { %5515 = vmatmul.mubr.msk.f32.vlgmr.msra.gmra.mrb[0].mxu1 %vm170_vm1, %v269_v60 }
 0x13a   :  { %5517 = vmatprep.mubr.msk.f32.mxu1 %vm170_vm1, %v270_v0 }
 0x13d   :  { %5518 = vmatmul.mubr.msk.f32.gmra.mrb[2].mxu1 %vm170_vm1, %v271_v2  ;;  %v583_v2 = vlaneseq }
 0x13e   :  { %5520 = vmatprep.mubr.msk.f32.mxu1 %vm170_vm1, %v272_v5 }
 0x13f   :  { %v6715_v3 = vshrl.u32 %v583_v2, 7  ;;  %v6720_v5 = vand.u32 127, %v583_v2 }
 0x141   :  { %5521 = vmatmul.mubr.msk.f32.gmra.mrb[4].mxu1 %vm170_vm1, %v273_v7  ;;  %v6718_v4 = vadd.s32 8, %v6715_v3  ;;  %vm590_vm3 = vcmp.eq.s32.totalorder %v6715_v3, %v6720_v5  ;;  %v6734_v8 = vadd.s32 24, %v6715_v3 }
 0x142   :  { %5523 = vmatprep.mubr.msk.f32.mxu1 %vm170_vm1, %v274_v9  ;;  %v6729_v7 = vsel %vm590_vm3, 1.0, %v6530_v6  ;;  %v6737_v9 = vadd.s32 16, %v6715_v3 }
 0x143   :  { %vm591_vm2 = vcmp.eq.s32.totalorder %v6718_v4, %v6720_v5  ;;  %vm593_vm4 = vcmp.eq.s32.totalorder %v6734_v8, %v6720_v5  ;;  %v6811_v4 = vmul.f32 1.5, %v6729_v7 }
 0x144   :  { %vm592_vm5 = vcmp.eq.s32.totalorder %v6737_v9, %v6720_v5  ;;  %vm6198_vm6 = vmpackc.low %vm591_vm2, %vm590_vm3 }
 0x145   :  { %5524 = vmatmul.mubr.msk.f32.gmra.mrb[6].mxu1 %vm170_vm1, %v275_v10  ;;  %vm6202_vm7 = vmpackc.low %vm593_vm4, %vm592_vm5 }
 0x20c   :  { %v5516_v12 = vpop.f32.mrb[0].mxu1 }
 0x20d   :  { %v387_v13 = vadd.f32 %v5516_v12, %v4905_v11  ;;  %v381_v14 = vpop.f32.mrb[1].mxu1 }
 0x20e   :  { %v382_v15 = vadd.f32 %v4905_v11, %v381_v14 }
 0x20f   :  { %v421_v16 = vsel %vm40_vm0, %v387_v13, 0.0 }
 0x210   :  { %v420_v17 = vsel %vm40_vm0, %v382_v15, 0.0  ;;  %v5519_v18 = vpop.f32.mrb[2].mxu1 }
 0x211   :  { %v422_v19 = vadd.f32 %v421_v16, %v420_v17  ;;  %v391_v20 = vpop.f32.mrb[3].mxu1  ;;  %v397_v21 = vadd.f32 %v5519_v18, %v4905_v11 }
 0x212   :  { %v392_v22 = vadd.f32 %v4905_v11, %v391_v20 }
 0x213   :  { %v425_v27 = vsel %vm40_vm0, %v397_v21, 0.0 }
 0x214   :  { %v423_v23 = vsel %vm40_vm0, %v392_v22, 0.0  ;;  %v5522_v24 = vpop.f32.mrb[4].mxu1 }
 0x215   :  { %v424_v25 = vadd.f32 %v423_v23, %v422_v19  ;;  %v401_v26 = vpop.f32.mrb[5].mxu1  ;;  %v407_v28 = vadd.f32 %v5522_v24, %v4905_v11  ;;  %v6760_v24 = vsel %vm593_vm4, 1.0, %v6530_v6 }
 0x216   :  { %v402_v29 = vadd.f32 %v4905_v11, %v401_v26 }
 0x217   :  { %v426_v30 = vadd.f32 %v425_v27, %v424_v25  ;;  %v429_v35 = vsel %vm40_vm0, %v407_v28, 0.0 }
 0x218   :  { %v427_v31 = vsel %vm40_vm0, %v402_v29, 0.0  ;;  %v5525_v32 = vpop.f32.mrb[6].mxu1 }
 0x219   :  { %v428_v33 = vadd.f32 %v427_v31, %v426_v30  ;;  %v411_v34 = vpop.f32.mrb[7].mxu1  ;;  %v417_v36 = vadd.f32 %v5525_v32, %v4905_v11  ;;  %v602_v31 = vld [vmem:[%s7093_s5] sm:$0xff] }
 0x21a   :  { %v412_v37 = vadd.f32 %v4905_v11, %v411_v34  ;;  %v6746_v11 = vsel %vm591_vm2, 1.0, %v6530_v6 }
 0x21b   :  { %v430_v38 = vadd.f32 %v429_v35, %v428_v33  ;;  %v433_v41 = vsel %vm40_vm0, %v417_v36, 0.0  ;;  %v603_v33 = vld [vmem:[%s7093_s5 + $0x8] sm:$0xff]  ;;  %v604_v35 = vld [vmem:[%s7093_s5 + $0x10] sm:$0xff]  ;;  %v6808_v3 = vmul.f32 1.5, %v6746_v11 }
 0x21c   :  { %v431_v39 = vsel %vm40_vm0, %v412_v37, 0.0 }
 0x21d   :  { %v432_v40 = vadd.f32 %v431_v39, %v430_v38 }
 0x21f   :  { %v434_v42 = vadd.f32 %v433_v41, %v432_v40 }
 0x221   :  { %v435_v43 = vrot.slane %v434_v42, 4 }
 0x223   :  { %v436_v44 = vadd.f32 %v435_v43, %v434_v42  ;;  %v605_v42 = vld [vmem:[%s7093_s5 + $0x18] sm:$0xff] }
 0x225   :  { %v437_v45 = vrot.slane %v436_v44, 2 }
 0x227   :  { %v438_v46 = vadd.f32 %v437_v45, %v436_v44 }
 0x229   :  { %v439_v47 = vrot.slane %v438_v46, 1 }
 0x22b   :  { %v440_v48 = vadd.f32 %v439_v47, %v438_v46 }
 0x22d   :  { %v441_v49 = vmul.f32 0.015625, %v440_v48 }
 0x22f   :  { %v6679_v50 = vsub.f32 %v412_v37, %v441_v49  ;;  %v6681_v51 = vsub.f32 %v382_v15, %v441_v49  ;;  %v6683_v52 = vsub.f32 %v387_v13, %v441_v49  ;;  %v6685_v53 = vsub.f32 %v392_v22, %v441_v49 }
 0x230   :  { %v6687_v54 = vsub.f32 %v397_v21, %v441_v49  ;;  %v6689_v55 = vsub.f32 %v402_v29, %v441_v49  ;;  %v6691_v56 = vsub.f32 %v407_v28, %v441_v49  ;;  %v6693_v57 = vsub.f32 %v417_v36, %v441_v49 }
 0x231   :  { %450 = vxpose.xlu0.b32.start [1/8] (short) (narrow) %v6681_v51, 32  ;;  %v6166_v58 = vpack.c.bf16 %v6683_v52, %v6681_v51  ;;  %v6755_v21 = vsel %vm592_vm5, 1.0, %v6530_v6 }
 0x232   :  { %v6170_v59 = vpack.c.bf16 %v6687_v54, %v6685_v53  ;;  %v6174_v60 = vpack.c.bf16 %v6691_v56, %v6689_v55  ;;  %v6178_v61 = vpack.c.bf16 %v6693_v57, %v6679_v50  ;;  %v6818_v5 = vmul.f32 1.5, %v6755_v21 }
 0x233   :  { %6167 = vmatprep.subr.bf16.mxu0 %v6166_v58 }
 0x234   :  { %6169 = vmatpush3.bf16.msra.mxu0 %v6166_v58 }
 0x235   :  { %451 = vxpose.xlu0.b32.cont [2/8] (short) (narrow) %v6683_v52, 32  ;;  %6171 = vmatprep.subr.bf16.mxu0 %v6170_v59 }
 0x238   :  { %6173 = vmatpush3.bf16.msra.mxu0 %v6170_v59 }
 0x239   :  { %452 = vxpose.xlu0.b32.cont [3/8] (short) (narrow) %v6685_v53, 32  ;;  %6175 = vmatprep.subr.bf16.mxu0 %v6174_v60 }
 0x23c   :  { %6177 = vmatpush3.bf16.msra.mxu0 %v6174_v60 }
 0x23d   :  { %453 = vxpose.xlu0.b32.cont [4/8] (short) (narrow) %v6687_v54, 32  ;;  %6179 = vmatprep.subr.bf16.mxu0 %v6178_v61 }
 0x240   :  { %6181 = vmatpush3.bf16.msra.mxu0 %v6178_v61 }
 0x241   :  { %454 = vxpose.xlu0.b32.cont [5/8] (short) (narrow) %v6689_v55, 32 }
 0x245   :  { %455 = vxpose.xlu0.b32.cont [6/8] (short) (narrow) %v6691_v56, 32 }
 0x249   :  { %456 = vxpose.xlu0.b32.cont [7/8] (short) (narrow) %v6679_v50, 32 }
 0x24d   :  { %457 = vxpose.xlu0.b32.end [8/8] (short) (narrow) %v6693_v57, 32 }
 0x2b1   :  { %v466_v62 = vpop.trf.xlu0 }
 0x2b2   :  { %5542 = vmatprep.mubr.msk.f32.mxu0 %vm170_vm1, %v466_v62 }
 0x2b5   :  { %v467_v63 = vpop.trf.xlu0 }
 0x2b6   :  { %5543 = vmatmul.mubr.msk.f32.vlgmr.msra.gmra.mrb[8].mxu0 %vm170_vm1, %v467_v63 }
 0x2b9   :  { %v468_v0 = vpop.trf.xlu0 }
 0x2ba   :  { %5545 = vmatprep.mubr.msk.f32.mxu0 %vm170_vm1, %v468_v0 }
 0x2bd   :  { %v469_v1 = vpop.trf.xlu0 }
 0x2be   :  { %5546 = vmatmul.mubr.msk.f32.gmra.mrb[10].mxu0 %vm170_vm1, %v469_v1 }
 0x2bf   :  { %5556 = vmatprep.mubr.msk.f32.mxu0 %vm40_vm0, %v6729_v7 }
 0x389   :  { %v5544_v10 = vpop.f32.mrb[8].mxu0 }
 0x38a   :  { %v580_v12 = vmul.f32 0.25, %v5544_v10  ;;  %v560_v13 = vpop.f32.mrb[9].mxu0 }
 0x38b   :  { %v579_v14 = vmul.f32 0.25, %v560_v13 }
 0x38c   :  { %v611_v15 = vmul.f32 %v6746_v11, %v580_v12  ;;  %v607_v62 = vmul.f32 %v603_v33, %v580_v12  ;;  %v6531_v12 = vmov 1.0|1.0  }
 0x38d   :  { %v610_v17 = vmul.f32 %v6729_v7, %v579_v14  ;;  %v606_v63 = vmul.f32 %v602_v31, %v579_v14 }
 0x38e   :  { %v617_v16 = vsel %vm40_vm0, %v611_v15, 0.0 }
 0x38f   :  { %618 = vadd.xlane.f32.xlu1 %v617_v16  ;;  %v614_v20 = vsel %vm40_vm0, %v610_v17, 0.0 }
 0x391   :  { %v5547_v18 = vpop.f32.mrb[10].mxu0 }
 0x392   :  { %v570_v19 = vpop.f32.mrb[11].mxu0  ;;  %v582_v22 = vmul.f32 0.25, %v5547_v18 }
 0x393   :  { %v581_v23 = vmul.f32 0.25, %v570_v19  ;;  %615 = vadd.xlane.f32.xlu1 %v614_v20 }
 0x394   :  { %v613_v27 = vmul.f32 %v6760_v24, %v582_v22  ;;  %v609_v1 = vmul.f32 %v605_v42, %v582_v22  ;;  %v6814_v22 = vmul.f32 1.5, %v6760_v24 }
 0x395   :  { %v612_v25 = vmul.f32 %v6755_v21, %v581_v23  ;;  %v608_v0 = vmul.f32 %v604_v35, %v581_v23 }
 0x396   :  { %v623_v28 = vsel %vm40_vm0, %v613_v27, 0.0 }
 0x397   :  { %v620_v26 = vsel %vm40_vm0, %v612_v25, 0.0 }
 0x398   :  { %621 = vadd.xlane.f32.xlu1 %v620_v26 }
 0x39c   :  { %624 = vadd.xlane.f32.xlu1 %v623_v28 }
 0x41c   :  { %v619_v29 = vpop.xlane.xlu1 %618 }
 0x41d   :  { %v627_v34 = vmul.f32 %v619_v29, %v603_v33 }
 0x41f   :  { %v631_v39 = vsel %vm40_vm0, %v627_v34, 0.0 }
 0x420   :  { %v616_v30 = vpop.xlane.xlu1 %615 }
 0x421   :  { %v626_v32 = vmul.f32 %v616_v30, %v602_v31 }
 0x423   :  { %v630_v37 = vsel %vm40_vm0, %v626_v32, 0.0 }
 0x424   :  { %v632_v41 = vadd.f32 %v631_v39, %v630_v37 }
 0x425   :  { %v622_v36 = vpop.xlane.xlu1 %621 }
 0x426   :  { %v628_v38 = vmul.f32 %v622_v36, %v604_v35 }
 0x428   :  { %v633_v40 = vsel %vm40_vm0, %v628_v38, 0.0 }
 0x429   :  { %v625_v43 = vpop.xlane.xlu1 %624  ;;  %v634_v45 = vadd.f32 %v633_v40, %v632_v41 }
 0x42a   :  { %v629_v44 = vmul.f32 %v625_v43, %v605_v42 }
 0x42c   :  { %v635_v46 = vsel %vm40_vm0, %v629_v44, 0.0 }
 0x42d   :  { %v636_v47 = vadd.f32 %v635_v46, %v634_v45 }
 0x42f   :  { %v637_v48 = vrot.slane %v636_v47, 4 }
 0x431   :  { %v638_v49 = vadd.f32 %v637_v48, %v636_v47 }
 0x433   :  { %v639_v58 = vrot.slane %v638_v49, 2 }
 0x435   :  { %v640_v59 = vadd.f32 %v639_v58, %v638_v49 }
 0x437   :  { %v641_v60 = vrot.slane %v640_v59, 1 }
 0x439   :  { %v642_v61 = vadd.f32 %v641_v60, %v640_v59 }
 0x43b   :  { %6526 = vrcp.f32 %v642_v61 }
 0x445   :  { %v6782_v2 = vpop.eup %6526 }
 0x446   :  { %v648_v6 = vmul.f32 %v6782_v2, %v609_v1  ;;  %v645_v10 = vmul.f32 %v6782_v2, %v606_v63  ;;  %v646_v13 = vmul.f32 %v6782_v2, %v607_v62  ;;  %v647_v15 = vmul.f32 %v6782_v2, %v608_v0 }
 0x447   :  { %6528 = vrsqrt.f32 %v6782_v2  ;;  %vm4744_vm8 = vcmp.eq.f32.partialorder %v6782_v2, inf  ;;  %vm4746_vm9 = vcmp.eq.f32.partialorder %v6782_v2, 0.0 }
 0x448   :  { %5570 = vmatprep.mubr.msk.f32.mxu1 %vm40_vm0, %v645_v10  ;;  %v6182_v16 = vpack.c.bf16 %v646_v13, %v645_v10  ;;  %v6186_v17 = vpack.c.bf16 %v648_v6, %v647_v15 }
 0x44a   :  { %6183 = vmatprep.subr.bf16.mxu0 %v6182_v16 }
 0x44b   :  { %6185 = vmatpush3.bf16.msra.mxu0 %v6182_v16 }
 0x44c   :  { %6187 = vmatprep.subr.bf16.mxu0 %v6186_v17 }
 0x44f   :  { %6189 = vmatpush3.bf16.msra.mxu0 %v6186_v17 }
 0x450   :  { %6199 = vmatprep.subr.msk.bf16.mxu0 %vm6198_vm6, %v6531_v12 }
 0x452   :  { %5557 = vmatmul.mubr.msk.f32.vlgmr.msra.gmra.mrb[12].mxu0 %vm40_vm0, %v6746_v11 }
 0x453   :  { %5559 = vmatprep.mubr.msk.f32.mxu0 %vm40_vm0, %v6755_v21  ;;  %6201 = vmatpush3.bf16.msk.msra.mxu0 %vm6198_vm6, %v6531_v12 }
 0x454   :  { %6203 = vmatprep.subr.msk.bf16.mxu0 %vm6202_vm7, %v6531_v12 }
 0x456   :  { %5560 = vmatmul.mubr.msk.f32.gmra.mrb[14].mxu0 %vm40_vm0, %v6760_v24 }
 0x457   :  { %6205 = vmatpush3.bf16.msk.msra.mxu0 %vm6202_vm7, %v6531_v12 }
 0x525   :  { %v5558_v14 = vpop.f32.mrb[12].mxu0 }
 0x526   :  { %v751_v18 = vmul.f32 0.5, %v5558_v14  ;;  %v731_v19 = vpop.f32.mrb[13].mxu0 }
 0x527   :  { %v750_v20 = vmul.f32 0.5, %v731_v19 }
 0x528   :  { %v755_v9 = vsub.f32 %v6808_v3, %v751_v18 }
 0x529   :  { %v754_v8 = vsub.f32 %v6811_v4, %v750_v20  ;;  %v5561_v23 = vpop.f32.mrb[14].mxu0 }
 0x52a   :  { %v753_v11 = vmul.f32 0.5, %v5561_v23  ;;  %v741_v25 = vpop.f32.mrb[15].mxu0 }
 0x52b   :  { %v752_v26 = vmul.f32 0.5, %v741_v25  ;;  %5584 = vmatprep.mubr.msk.f32.mxu0 %vm40_vm0, %v754_v8  ;;  %v6190_v7 = vpack.c.bf16 %v755_v9, %v754_v8 }
 0x52c   :  { %v757_v27 = vsub.f32 %v6814_v22, %v753_v11  ;;  %5585 = vmatmul.mubr.msk.f32.vlgmr.msra.gmra.mrb[16].mxu0 %vm40_vm0, %v755_v9 }
 0x52d   :  { %v756_v24 = vsub.f32 %v6818_v5, %v752_v26  ;;  %6191 = vmatprep.subr.bf16.mxu1 %v6190_v7 }
 0x52e   :  { %6193 = vmatpush3.bf16.msra.mxu1 %v6190_v7 }
 0x52f   :  { %5587 = vmatprep.mubr.msk.f32.mxu0 %vm40_vm0, %v756_v24  ;;  %v6194_v21 = vpack.c.bf16 %v757_v27, %v756_v24 }
 0x530   :  { %5588 = vmatmul.mubr.msk.f32.gmra.mrb[18].mxu0 %vm40_vm0, %v757_v27 }
 0x531   :  { %6195 = vmatprep.subr.bf16.mxu1 %v6194_v21 }
 0x532   :  { %6197 = vmatpush3.bf16.msra.mxu1 %v6194_v21 }
 0x535   :  { %5571 = vmatmul.mubr.msk.f32.vlgmr.msra.gmra.mrb[8].mxu1 %vm40_vm0, %v646_v13 }
 0x536   :  { %5573 = vmatprep.mubr.msk.f32.mxu1 %vm40_vm0, %v647_v15 }
 0x539   :  { %5574 = vmatmul.mubr.msk.f32.gmra.mrb[10].mxu1 %vm40_vm0, %v648_v6 }
 0x5ff   :  { %v5586_v28 = vpop.f32.mrb[16].mxu0 }
 0x600   :  { %v933_v29 = vpop.f32.mrb[17].mxu0 }
 0x601   :  { %v6222_v30 = vpack.c.bf16 %v5586_v28, %v933_v29  ;;  %5598 = vmatprep.mubr.msk.f32.mxu1 %vm40_vm0, %v933_v29 }
 0x603   :  { %v5589_v31 = vpop.f32.mrb[18].mxu0 }
 0x604   :  { %v943_v32 = vpop.f32.mrb[19].mxu0 }
 0x605   :  { %v6226_v33 = vpack.c.bf16 %v5589_v31, %v943_v32 }
 0x608   :  { %v5572_v34 = vpop.f32.mrb[8].mxu1 }
 0x609   :  { %v836_v35 = vpop.f32.mrb[9].mxu1 }
 0x60a   :  { %v6206_v36 = vpack.c.bf16 %v5572_v34, %v836_v35  ;;  %5612 = vmatprep.mubr.msk.f32.mxu0 %vm40_vm0, %v836_v35 }
 0x60c   :  { %v5575_v37 = vpop.f32.mrb[10].mxu1  ;;  %6207 = vmatprep.subr.bf16.mxu1 %v6206_v36 }
 0x60d   :  { %v846_v38 = vpop.f32.mrb[11].mxu1  ;;  %6209 = vmatpush3.bf16.msra.mxu1 %v6206_v36 }
 0x60e   :  { %v6210_v39 = vpack.c.bf16 %v5575_v37, %v846_v38 }
 0x610   :  { %6211 = vmatprep.subr.bf16.mxu1 %v6210_v39 }
 0x611   :  { %6213 = vmatpush3.bf16.msra.mxu1 %v6210_v39 }
 0x612   :  { %6223 = vmatprep.subr.bf16.mxu1 %v6222_v30 }
 0x614   :  { %5599 = vmatmul.mubr.msk.f32.vlgmr.msra.gmra.mrb[12].mxu1 %vm40_vm0, %v5586_v28 }
 0x615   :  { %5601 = vmatprep.mubr.msk.f32.mxu1 %vm40_vm0, %v943_v32  ;;  %6225 = vmatpush3.bf16.msra.mxu1 %v6222_v30 }
 0x616   :  { %6227 = vmatprep.subr.bf16.mxu1 %v6226_v33 }
 0x618   :  { %5602 = vmatmul.mubr.msk.f32.gmra.mrb[14].mxu1 %vm40_vm0, %v5589_v31 }
 0x619   :  { %6229 = vmatpush3.bf16.msra.mxu1 %v6226_v33 }
 0x6e7   :  { %v5600_v40 = vpop.f32.mrb[12].mxu1 }
 0x6e8   :  { %v1050_v41 = vmul.f32 0.5, %v5600_v40  ;;  %v1030_v42 = vpop.f32.mrb[13].mxu1 }
 0x6e9   :  { %v1049_v43 = vmul.f32 0.5, %v1030_v42 }
 0x6ea   :  { %v1054_v44 = vsub.f32 %v6808_v3, %v1050_v41 }
 0x6eb   :  { %v1053_v45 = vsub.f32 %v6811_v4, %v1049_v43  ;;  %v5603_v46 = vpop.f32.mrb[14].mxu1 }
 0x6ec   :  { %v1052_v47 = vmul.f32 0.5, %v5603_v46  ;;  %v1040_v48 = vpop.f32.mrb[15].mxu1 }
 0x6ed   :  { %v1051_v49 = vmul.f32 0.5, %v1040_v48  ;;  %5626 = vmatprep.mubr.msk.f32.mxu1 %vm40_vm0, %v1053_v45  ;;  %v6214_v58 = vpack.c.bf16 %v1054_v44, %v1053_v45 }
 0x6ee   :  { %v1056_v59 = vsub.f32 %v6814_v22, %v1052_v47  ;;  %5627 = vmatmul.mubr.msk.f32.vlgmr.msra.gmra.mrb[16].mxu1 %vm40_vm0, %v1054_v44 }
 0x6ef   :  { %v1055_v60 = vsub.f32 %v6818_v5, %v1051_v49  ;;  %6215 = vmatprep.subr.bf16.mxu0 %v6214_v58 }
 0x6f0   :  { %6217 = vmatpush3.bf16.msra.mxu0 %v6214_v58 }
 0x6f1   :  { %5629 = vmatprep.mubr.msk.f32.mxu1 %vm40_vm0, %v1055_v60  ;;  %v6218_v61 = vpack.c.bf16 %v1056_v59, %v1055_v60 }
 0x6f2   :  { %5630 = vmatmul.mubr.msk.f32.gmra.mrb[18].mxu1 %vm40_vm0, %v1056_v59 }
 0x6f3   :  { %6219 = vmatprep.subr.bf16.mxu0 %v6218_v61 }
 0x6f4   :  { %6221 = vmatpush3.bf16.msra.mxu0 %v6218_v61 }
 0x6f7   :  { %5613 = vmatmul.mubr.msk.f32.vlgmr.msra.gmra.mrb[20].mxu0 %vm40_vm0, %v5572_v34 }
 0x6f8   :  { %5615 = vmatprep.mubr.msk.f32.mxu0 %vm40_vm0, %v846_v38 }
 0x6fb   :  { %5616 = vmatmul.mubr.msk.f32.gmra.mrb[22].mxu0 %vm40_vm0, %v5575_v37 }
 0x7c1   :  { %v5628_v62 = vpop.f32.mrb[16].mxu1 }
 0x7c2   :  { %v1232_v63 = vpop.f32.mrb[17].mxu1 }
 0x7c3   :  { %v6246_v0 = vpack.c.bf16 %v5628_v62, %v1232_v63  ;;  %5640 = vmatprep.mubr.msk.f32.mxu0 %vm40_vm0, %v1232_v63 }
 0x7c5   :  { %v5631_v1 = vpop.f32.mrb[18].mxu1 }
 0x7c6   :  { %v1242_v6 = vpop.f32.mrb[19].mxu1 }
 0x7c7   :  { %v6250_v10 = vpack.c.bf16 %v5631_v1, %v1242_v6 }
 0x7ca   :  { %v5614_v13 = vpop.f32.mrb[20].mxu0 }
 0x7cb   :  { %v1135_v15 = vpop.f32.mrb[21].mxu0 }
 0x7cc   :  { %v6230_v16 = vpack.c.bf16 %v5614_v13, %v1135_v15  ;;  %5654 = vmatprep.mubr.msk.f32.mxu1 %vm40_vm0, %v1135_v15 }
 0x7ce   :  { %v5617_v17 = vpop.f32.mrb[22].mxu0  ;;  %6231 = vmatprep.subr.bf16.mxu0 %v6230_v16 }
 0x7cf   :  { %v1145_v12 = vpop.f32.mrb[23].mxu0  ;;  %6233 = vmatpush3.bf16.msra.mxu0 %v6230_v16 }
 0x7d0   :  { %v6234_v14 = vpack.c.bf16 %v5617_v17, %v1145_v12 }
 0x7d2   :  { %6235 = vmatprep.subr.bf16.mxu0 %v6234_v14 }
 0x7d3   :  { %6237 = vmatpush3.bf16.msra.mxu0 %v6234_v14 }
 0x7d4   :  { %6247 = vmatprep.subr.bf16.mxu0 %v6246_v0 }
 0x7d6   :  { %5641 = vmatmul.mubr.msk.f32.vlgmr.msra.gmra.mrb[24].mxu0 %vm40_vm0, %v5628_v62 }
 0x7d7   :  { %5643 = vmatprep.mubr.msk.f32.mxu0 %vm40_vm0, %v1242_v6  ;;  %6249 = vmatpush3.bf16.msra.mxu0 %v6246_v0 }
 0x7d8   :  { %6251 = vmatprep.subr.bf16.mxu0 %v6250_v10 }
 0x7da   :  { %5644 = vmatmul.mubr.msk.f32.gmra.mrb[26].mxu0 %vm40_vm0, %v5631_v1 }
 0x7db   :  { %6253 = vmatpush3.bf16.msra.mxu0 %v6250_v10 }
 0x8a9   :  { %v5642_v18 = vpop.f32.mrb[24].mxu0 }
 0x8aa   :  { %v1349_v19 = vmul.f32 0.5, %v5642_v18  ;;  %v1329_v20 = vpop.f32.mrb[25].mxu0 }
 0x8ab   :  { %v1348_v9 = vmul.f32 0.5, %v1329_v20 }
 0x8ac   :  { %v1353_v8 = vsub.f32 %v6808_v3, %v1349_v19 }
 0x8ad   :  { %v1352_v23 = vsub.f32 %v6811_v4, %v1348_v9  ;;  %v5645_v11 = vpop.f32.mrb[26].mxu0 }
 0x8ae   :  { %v1351_v25 = vmul.f32 0.5, %v5645_v11  ;;  %v1339_v26 = vpop.f32.mrb[27].mxu0 }
 0x8af   :  { %v1350_v7 = vmul.f32 0.5, %v1339_v26  ;;  %5668 = vmatprep.mubr.msk.f32.mxu0 %vm40_vm0, %v1352_v23  ;;  %v6238_v27 = vpack.c.bf16 %v1353_v8, %v1352_v23 }
 0x8b0   :  { %v1355_v24 = vsub.f32 %v6814_v22, %v1351_v25  ;;  %5669 = vmatmul.mubr.msk.f32.vlgmr.msra.gmra.mrb[28].mxu0 %vm40_vm0, %v1353_v8 }
 0x8b1   :  { %v1354_v21 = vsub.f32 %v6818_v5, %v1350_v7  ;;  %6239 = vmatprep.subr.bf16.mxu1 %v6238_v27 }
 0x8b2   :  { %6241 = vmatpush3.bf16.msra.mxu1 %v6238_v27 }
 0x8b3   :  { %5671 = vmatprep.mubr.msk.f32.mxu0 %vm40_vm0, %v1354_v21  ;;  %v6242_v28 = vpack.c.bf16 %v1355_v24, %v1354_v21 }
 0x8b4   :  { %5672 = vmatmul.mubr.msk.f32.gmra.mrb[30].mxu0 %vm40_vm0, %v1355_v24 }
 0x8b5   :  { %6243 = vmatprep.subr.bf16.mxu1 %v6242_v28 }
 0x8b6   :  { %6245 = vmatpush3.bf16.msra.mxu1 %v6242_v28 }
 0x8b9   :  { %5655 = vmatmul.mubr.msk.f32.vlgmr.msra.gmra.mrb[20].mxu1 %vm40_vm0, %v5614_v13 }
 0x8ba   :  { %5657 = vmatprep.mubr.msk.f32.mxu1 %vm40_vm0, %v1145_v12 }
 0x8bd   :  { %5658 = vmatmul.mubr.msk.f32.gmra.mrb[22].mxu1 %vm40_vm0, %v5617_v17 }
 0x983   :  { %v5670_v29 = vpop.f32.mrb[28].mxu0 }
 0x984   :  { %v1531_v30 = vpop.f32.mrb[29].mxu0 }
 0x985   :  { %v6270_v31 = vpack.c.bf16 %v5670_v29, %v1531_v30  ;;  %5682 = vmatprep.mubr.msk.f32.mxu1 %vm40_vm0, %v1531_v30 }
 0x987   :  { %v5673_v32 = vpop.f32.mrb[30].mxu0 }
 0x988   :  { %v1541_v33 = vpop.f32.mrb[31].mxu0 }
 0x989   :  { %v6274_v34 = vpack.c.bf16 %v5673_v32, %v1541_v33 }
 0x98c   :  { %v5656_v35 = vpop.f32.mrb[20].mxu1 }
 0x98d   :  { %v1434_v36 = vpop.f32.mrb[21].mxu1 }
 0x98e   :  { %v6254_v37 = vpack.c.bf16 %v5656_v35, %v1434_v36  ;;  %5696 = vmatprep.mubr.msk.f32.mxu0 %vm40_vm0, %v1434_v36 }
 0x990   :  { %v5659_v38 = vpop.f32.mrb[22].mxu1  ;;  %6255 = vmatprep.subr.bf16.mxu1 %v6254_v37 }
 0x991   :  { %v1444_v39 = vpop.f32.mrb[23].mxu1  ;;  %6257 = vmatpush3.bf16.msra.mxu1 %v6254_v37 }
 0x992   :  { %v6258_v40 = vpack.c.bf16 %v5659_v38, %v1444_v39 }
 0x994   :  { %6259 = vmatprep.subr.bf16.mxu1 %v6258_v40 }
 0x995   :  { %6261 = vmatpush3.bf16.msra.mxu1 %v6258_v40 }
 0x996   :  { %6271 = vmatprep.subr.bf16.mxu1 %v6270_v31 }
 0x998   :  { %5683 = vmatmul.mubr.msk.f32.vlgmr.msra.gmra.mrb[24].mxu1 %vm40_vm0, %v5670_v29 }
 0x999   :  { %5685 = vmatprep.mubr.msk.f32.mxu1 %vm40_vm0, %v1541_v33  ;;  %6273 = vmatpush3.bf16.msra.mxu1 %v6270_v31 }
 0x99a   :  { %6275 = vmatprep.subr.bf16.mxu1 %v6274_v34 }
 0x99c   :  { %5686 = vmatmul.mubr.msk.f32.gmra.mrb[26].mxu1 %vm40_vm0, %v5673_v32 }
 0x99d   :  { %6277 = vmatpush3.bf16.msra.mxu1 %v6274_v34 }
 0xa6b   :  { %v5684_v41 = vpop.f32.mrb[24].mxu1 }
 0xa6c   :  { %v1648_v42 = vmul.f32 0.5, %v5684_v41  ;;  %v1628_v43 = vpop.f32.mrb[25].mxu1 }
 0xa6d   :  { %v1647_v44 = vmul.f32 0.5, %v1628_v43 }
 0xa6e   :  { %v1652_v45 = vsub.f32 %v6808_v3, %v1648_v42 }
 0xa6f   :  { %v1651_v46 = vsub.f32 %v6811_v4, %v1647_v44  ;;  %v5687_v47 = vpop.f32.mrb[26].mxu1 }
 0xa70   :  { %v1650_v48 = vmul.f32 0.5, %v5687_v47  ;;  %v1638_v49 = vpop.f32.mrb[27].mxu1 }
 0xa71   :  { %v1649_v58 = vmul.f32 0.5, %v1638_v49  ;;  %5710 = vmatprep.mubr.msk.f32.mxu1 %vm40_vm0, %v1651_v46  ;;  %v6262_v59 = vpack.c.bf16 %v1652_v45, %v1651_v46 }
 0xa72   :  { %v1654_v60 = vsub.f32 %v6814_v22, %v1650_v48  ;;  %5711 = vmatmul.mubr.msk.f32.vlgmr.msra.gmra.mrb[28].mxu1 %vm40_vm0, %v1652_v45 }
 0xa73   :  { %v1653_v61 = vsub.f32 %v6818_v5, %v1649_v58  ;;  %6263 = vmatprep.subr.bf16.mxu0 %v6262_v59 }
 0xa74   :  { %6265 = vmatpush3.bf16.msra.mxu0 %v6262_v59 }
 0xa75   :  { %5713 = vmatprep.mubr.msk.f32.mxu1 %vm40_vm0, %v1653_v61  ;;  %v6266_v62 = vpack.c.bf16 %v1654_v60, %v1653_v61 }
 0xa76   :  { %5714 = vmatmul.mubr.msk.f32.gmra.mrb[30].mxu1 %vm40_vm0, %v1654_v60 }
 0xa77   :  { %6267 = vmatprep.subr.bf16.mxu0 %v6266_v62 }
 0xa78   :  { %6269 = vmatpush3.bf16.msra.mxu0 %v6266_v62 }
 0xa7b   :  { %5697 = vmatmul.mubr.msk.f32.vlgmr.msra.gmra.mrb[32].mxu0 %vm40_vm0, %v5656_v35 }
 0xa7c   :  { %5699 = vmatprep.mubr.msk.f32.mxu0 %vm40_vm0, %v1444_v39 }
 0xa7f   :  { %5700 = vmatmul.mubr.msk.f32.gmra.mrb[34].mxu0 %vm40_vm0, %v5659_v38 }
 0xb45   :  { %v5712_v63 = vpop.f32.mrb[28].mxu1 }
 0xb46   :  { %v1830_v0 = vpop.f32.mrb[29].mxu1 }
 0xb47   :  { %v6294_v1 = vpack.c.bf16 %v5712_v63, %v1830_v0  ;;  %5724 = vmatprep.mubr.msk.f32.mxu0 %vm40_vm0, %v1830_v0 }
 0xb49   :  { %v5715_v6 = vpop.f32.mrb[30].mxu1 }
 0xb4a   :  { %v1840_v10 = vpop.f32.mrb[31].mxu1 }
 0xb4b   :  { %v6298_v13 = vpack.c.bf16 %v5715_v6, %v1840_v10 }
 0xb4e   :  { %v5698_v15 = vpop.f32.mrb[32].mxu0 }
 0xb4f   :  { %v1733_v16 = vpop.f32.mrb[33].mxu0 }
 0xb50   :  { %v6278_v17 = vpack.c.bf16 %v5698_v15, %v1733_v16  ;;  %5738 = vmatprep.mubr.msk.f32.mxu1 %vm40_vm0, %v1733_v16 }
 0xb52   :  { %v5701_v12 = vpop.f32.mrb[34].mxu0  ;;  %6279 = vmatprep.subr.bf16.mxu0 %v6278_v17 }
 0xb53   :  { %v1743_v14 = vpop.f32.mrb[35].mxu0  ;;  %6281 = vmatpush3.bf16.msra.mxu0 %v6278_v17 }
 0xb54   :  { %v6282_v18 = vpack.c.bf16 %v5701_v12, %v1743_v14 }
 0xb56   :  { %6283 = vmatprep.subr.bf16.mxu0 %v6282_v18 }
 0xb57   :  { %6285 = vmatpush3.bf16.msra.mxu0 %v6282_v18 }
 0xb58   :  { %6295 = vmatprep.subr.bf16.mxu0 %v6294_v1 }
 0xb5a   :  { %5725 = vmatmul.mubr.msk.f32.vlgmr.msra.gmra.mrb[36].mxu0 %vm40_vm0, %v5712_v63 }
 0xb5b   :  { %5727 = vmatprep.mubr.msk.f32.mxu0 %vm40_vm0, %v1840_v10  ;;  %6297 = vmatpush3.bf16.msra.mxu0 %v6294_v1 }
 0xb5c   :  { %6299 = vmatprep.subr.bf16.mxu0 %v6298_v13 }
 0xb5e   :  { %5728 = vmatmul.mubr.msk.f32.gmra.mrb[38].mxu0 %vm40_vm0, %v5715_v6 }
 0xb5f   :  { %6301 = vmatpush3.bf16.msra.mxu0 %v6298_v13 }
 0xc2d   :  { %v5726_v19 = vpop.f32.mrb[36].mxu0 }
 0xc2e   :  { %v1947_v20 = vmul.f32 0.5, %v5726_v19  ;;  %v1927_v9 = vpop.f32.mrb[37].mxu0 }
 0xc2f   :  { %v1946_v8 = vmul.f32 0.5, %v1927_v9 }
 0xc30   :  { %v1951_v23 = vsub.f32 %v6808_v3, %v1947_v20 }
 0xc31   :  { %v1950_v11 = vsub.f32 %v6811_v4, %v1946_v8  ;;  %v5729_v25 = vpop.f32.mrb[38].mxu0 }
 0xc32   :  { %v1949_v26 = vmul.f32 0.5, %v5729_v25  ;;  %v1937_v7 = vpop.f32.mrb[39].mxu0 }
 0xc33   :  { %v1948_v27 = vmul.f32 0.5, %v1937_v7  ;;  %5752 = vmatprep.mubr.msk.f32.mxu0 %vm40_vm0, %v1950_v11  ;;  %v6286_v24 = vpack.c.bf16 %v1951_v23, %v1950_v11 }
 0xc34   :  { %v1953_v21 = vsub.f32 %v6814_v22, %v1949_v26  ;;  %5753 = vmatmul.mubr.msk.f32.vlgmr.msra.gmra.mrb[40].mxu0 %vm40_vm0, %v1951_v23 }
 0xc35   :  { %v1952_v28 = vsub.f32 %v6818_v5, %v1948_v27  ;;  %6287 = vmatprep.subr.bf16.mxu1 %v6286_v24 }
 0xc36   :  { %6289 = vmatpush3.bf16.msra.mxu1 %v6286_v24 }
 0xc37   :  { %5755 = vmatprep.mubr.msk.f32.mxu0 %vm40_vm0, %v1952_v28  ;;  %v6290_v29 = vpack.c.bf16 %v1953_v21, %v1952_v28 }
 0xc38   :  { %5756 = vmatmul.mubr.msk.f32.gmra.mrb[42].mxu0 %vm40_vm0, %v1953_v21 }
 0xc39   :  { %6291 = vmatprep.subr.bf16.mxu1 %v6290_v29 }
 0xc3a   :  { %6293 = vmatpush3.bf16.msra.mxu1 %v6290_v29 }
 0xc3d   :  { %5739 = vmatmul.mubr.msk.f32.vlgmr.msra.gmra.mrb[32].mxu1 %vm40_vm0, %v5698_v15 }
 0xc3e   :  { %5741 = vmatprep.mubr.msk.f32.mxu1 %vm40_vm0, %v1743_v14 }
 0xc41   :  { %5742 = vmatmul.mubr.msk.f32.gmra.mrb[34].mxu1 %vm40_vm0, %v5701_v12 }
 0xd07   :  { %v5754_v30 = vpop.f32.mrb[40].mxu0 }
 0xd08   :  { %v2129_v31 = vpop.f32.mrb[41].mxu0 }
 0xd09   :  { %v6318_v32 = vpack.c.bf16 %v5754_v30, %v2129_v31  ;;  %5766 = vmatprep.mubr.msk.f32.mxu1 %vm40_vm0, %v2129_v31 }
 0xd0b   :  { %v5757_v33 = vpop.f32.mrb[42].mxu0 }
 0xd0c   :  { %v2139_v34 = vpop.f32.mrb[43].mxu0 }
 0xd0d   :  { %v6322_v35 = vpack.c.bf16 %v5757_v33, %v2139_v34 }
 0xd10   :  { %v5740_v36 = vpop.f32.mrb[32].mxu1 }
 0xd11   :  { %v2032_v37 = vpop.f32.mrb[33].mxu1 }
 0xd12   :  { %v6302_v38 = vpack.c.bf16 %v5740_v36, %v2032_v37  ;;  %5780 = vmatprep.mubr.msk.f32.mxu0 %vm40_vm0, %v2032_v37 }
 0xd14   :  { %v5743_v39 = vpop.f32.mrb[34].mxu1  ;;  %6303 = vmatprep.subr.bf16.mxu1 %v6302_v38 }
 0xd15   :  { %v2042_v40 = vpop.f32.mrb[35].mxu1  ;;  %6305 = vmatpush3.bf16.msra.mxu1 %v6302_v38 }
 0xd16   :  { %v6306_v41 = vpack.c.bf16 %v5743_v39, %v2042_v40 }
 0xd18   :  { %6307 = vmatprep.subr.bf16.mxu1 %v6306_v41 }
 0xd19   :  { %6309 = vmatpush3.bf16.msra.mxu1 %v6306_v41 }
 0xd1a   :  { %6319 = vmatprep.subr.bf16.mxu1 %v6318_v32 }
 0xd1c   :  { %5767 = vmatmul.mubr.msk.f32.vlgmr.msra.gmra.mrb[36].mxu1 %vm40_vm0, %v5754_v30 }
 0xd1d   :  { %5769 = vmatprep.mubr.msk.f32.mxu1 %vm40_vm0, %v2139_v34  ;;  %6321 = vmatpush3.bf16.msra.mxu1 %v6318_v32 }
 0xd1e   :  { %6323 = vmatprep.subr.bf16.mxu1 %v6322_v35 }
 0xd20   :  { %5770 = vmatmul.mubr.msk.f32.gmra.mrb[38].mxu1 %vm40_vm0, %v5757_v33 }
 0xd21   :  { %6325 = vmatpush3.bf16.msra.mxu1 %v6322_v35 }
 0xdef   :  { %v5768_v42 = vpop.f32.mrb[36].mxu1 }
 0xdf0   :  { %v2246_v43 = vmul.f32 0.5, %v5768_v42  ;;  %v2226_v44 = vpop.f32.mrb[37].mxu1 }
 0xdf1   :  { %v2245_v45 = vmul.f32 0.5, %v2226_v44 }
 0xdf2   :  { %v2250_v46 = vsub.f32 %v6808_v3, %v2246_v43 }
 0xdf3   :  { %v2249_v47 = vsub.f32 %v6811_v4, %v2245_v45  ;;  %v5771_v48 = vpop.f32.mrb[38].mxu1 }
 0xdf4   :  { %v2248_v49 = vmul.f32 0.5, %v5771_v48  ;;  %v2236_v58 = vpop.f32.mrb[39].mxu1 }
 0xdf5   :  { %v2247_v59 = vmul.f32 0.5, %v2236_v58  ;;  %5794 = vmatprep.mubr.msk.f32.mxu1 %vm40_vm0, %v2249_v47  ;;  %v6310_v60 = vpack.c.bf16 %v2250_v46, %v2249_v47 }
 0xdf6   :  { %v2252_v61 = vsub.f32 %v6814_v22, %v2248_v49  ;;  %5795 = vmatmul.mubr.msk.f32.vlgmr.msra.gmra.mrb[40].mxu1 %vm40_vm0, %v2250_v46 }
 0xdf7   :  { %v2251_v62 = vsub.f32 %v6818_v5, %v2247_v59  ;;  %6311 = vmatprep.subr.bf16.mxu0 %v6310_v60 }
 0xdf8   :  { %6313 = vmatpush3.bf16.msra.mxu0 %v6310_v60 }
 0xdf9   :  { %5797 = vmatprep.mubr.msk.f32.mxu1 %vm40_vm0, %v2251_v62  ;;  %v6314_v63 = vpack.c.bf16 %v2252_v61, %v2251_v62 }
 0xdfa   :  { %5798 = vmatmul.mubr.msk.f32.gmra.mrb[42].mxu1 %vm40_vm0, %v2252_v61 }
 0xdfb   :  { %6315 = vmatprep.subr.bf16.mxu0 %v6314_v63 }
 0xdfc   :  { %6317 = vmatpush3.bf16.msra.mxu0 %v6314_v63 }
 0xdff   :  { %5781 = vmatmul.mubr.msk.f32.vlgmr.msra.gmra.mrb[44].mxu0 %vm40_vm0, %v5740_v36 }
 0xe00   :  { %5783 = vmatprep.mubr.msk.f32.mxu0 %vm40_vm0, %v2042_v40 }
 0xe03   :  { %5784 = vmatmul.mubr.msk.f32.gmra.mrb[46].mxu0 %vm40_vm0, %v5743_v39 }
 0xec9   :  { %v5796_v0 = vpop.f32.mrb[40].mxu1 }
 0xeca   :  { %v2428_v1 = vpop.f32.mrb[41].mxu1 }
 0xecb   :  { %v6342_v6 = vpack.c.bf16 %v5796_v0, %v2428_v1  ;;  %5808 = vmatprep.mubr.msk.f32.mxu0 %vm40_vm0, %v2428_v1 }
 0xecd   :  { %v5799_v10 = vpop.f32.mrb[42].mxu1 }
 0xece   :  { %v2438_v13 = vpop.f32.mrb[43].mxu1 }
 0xecf   :  { %v6346_v15 = vpack.c.bf16 %v5799_v10, %v2438_v13 }
 0xed2   :  { %v5782_v16 = vpop.f32.mrb[44].mxu0 }
 0xed3   :  { %v2331_v17 = vpop.f32.mrb[45].mxu0 }
 0xed4   :  { %v6326_v12 = vpack.c.bf16 %v5782_v16, %v2331_v17  ;;  %5822 = vmatprep.mubr.msk.f32.mxu1 %vm40_vm0, %v2331_v17 }
 0xed6   :  { %v5785_v14 = vpop.f32.mrb[46].mxu0  ;;  %6327 = vmatprep.subr.bf16.mxu0 %v6326_v12 }
 0xed7   :  { %v2341_v18 = vpop.f32.mrb[47].mxu0  ;;  %6329 = vmatpush3.bf16.msra.mxu0 %v6326_v12 }
 0xed8   :  { %v6330_v19 = vpack.c.bf16 %v5785_v14, %v2341_v18 }
 0xeda   :  { %6331 = vmatprep.subr.bf16.mxu0 %v6330_v19 }
 0xedb   :  { %6333 = vmatpush3.bf16.msra.mxu0 %v6330_v19 }
 0xedc   :  { %6343 = vmatprep.subr.bf16.mxu0 %v6342_v6 }
 0xede   :  { %5809 = vmatmul.mubr.msk.f32.vlgmr.msra.gmra.mrb[48].mxu0 %vm40_vm0, %v5796_v0 }
 0xedf   :  { %5811 = vmatprep.mubr.msk.f32.mxu0 %vm40_vm0, %v2438_v13  ;;  %6345 = vmatpush3.bf16.msra.mxu0 %v6342_v6 }
 0xee0   :  { %6347 = vmatprep.subr.bf16.mxu0 %v6346_v15 }
 0xee2   :  { %5812 = vmatmul.mubr.msk.f32.gmra.mrb[50].mxu0 %vm40_vm0, %v5799_v10 }
 0xee3   :  { %6349 = vmatpush3.bf16.msra.mxu0 %v6346_v15 }
 0xfb1   :  { %v5810_v20 = vpop.f32.mrb[48].mxu0 }
 0xfb2   :  { %v2545_v9 = vmul.f32 0.5, %v5810_v20  ;;  %v2525_v8 = vpop.f32.mrb[49].mxu0 }
 0xfb3   :  { %v2544_v23 = vmul.f32 0.5, %v2525_v8 }
 0xfb4   :  { %v2549_v11 = vsub.f32 %v6808_v3, %v2545_v9 }
 0xfb5   :  { %v2548_v25 = vsub.f32 %v6811_v4, %v2544_v23  ;;  %v5813_v26 = vpop.f32.mrb[50].mxu0 }
 0xfb6   :  { %v2547_v7 = vmul.f32 0.5, %v5813_v26  ;;  %v2535_v27 = vpop.f32.mrb[51].mxu0 }
 0xfb7   :  { %v2546_v24 = vmul.f32 0.5, %v2535_v27  ;;  %5836 = vmatprep.mubr.msk.f32.mxu0 %vm40_vm0, %v2548_v25  ;;  %v6334_v21 = vpack.c.bf16 %v2549_v11, %v2548_v25 }
 0xfb8   :  { %v2551_v28 = vsub.f32 %v6814_v22, %v2547_v7  ;;  %5837 = vmatmul.mubr.msk.f32.vlgmr.msra.gmra.mrb[52].mxu0 %vm40_vm0, %v2549_v11 }
 0xfb9   :  { %v2550_v29 = vsub.f32 %v6818_v5, %v2546_v24  ;;  %6335 = vmatprep.subr.bf16.mxu1 %v6334_v21 }
 0xfba   :  { %6337 = vmatpush3.bf16.msra.mxu1 %v6334_v21 }
 0xfbb   :  { %5839 = vmatprep.mubr.msk.f32.mxu0 %vm40_vm0, %v2550_v29  ;;  %v6338_v30 = vpack.c.bf16 %v2551_v28, %v2550_v29 }
 0xfbc   :  { %5840 = vmatmul.mubr.msk.f32.gmra.mrb[54].mxu0 %vm40_vm0, %v2551_v28 }
 0xfbd   :  { %6339 = vmatprep.subr.bf16.mxu1 %v6338_v30 }
 0xfbe   :  { %6341 = vmatpush3.bf16.msra.mxu1 %v6338_v30 }
 0xfc1   :  { %5823 = vmatmul.mubr.msk.f32.vlgmr.msra.gmra.mrb[44].mxu1 %vm40_vm0, %v5782_v16 }
 0xfc2   :  { %5825 = vmatprep.mubr.msk.f32.mxu1 %vm40_vm0, %v2341_v18 }
 0xfc5   :  { %5826 = vmatmul.mubr.msk.f32.gmra.mrb[46].mxu1 %vm40_vm0, %v5785_v14 }
0x108b   :  { %v5838_v31 = vpop.f32.mrb[52].mxu0 }
0x108c   :  { %v2727_v32 = vpop.f32.mrb[53].mxu0 }
0x108d   :  { %v6366_v33 = vpack.c.bf16 %v5838_v31, %v2727_v32  ;;  %5850 = vmatprep.mubr.msk.f32.mxu1 %vm40_vm0, %v2727_v32 }
0x108f   :  { %v5841_v34 = vpop.f32.mrb[54].mxu0 }
0x1090   :  { %v2737_v35 = vpop.f32.mrb[55].mxu0 }
0x1091   :  { %v6370_v36 = vpack.c.bf16 %v5841_v34, %v2737_v35 }
0x1094   :  { %v5824_v37 = vpop.f32.mrb[44].mxu1 }
0x1095   :  { %v2630_v38 = vpop.f32.mrb[45].mxu1 }
0x1096   :  { %v6350_v39 = vpack.c.bf16 %v5824_v37, %v2630_v38  ;;  %5864 = vmatprep.mubr.msk.f32.mxu0 %vm40_vm0, %v2630_v38 }
0x1098   :  { %v5827_v40 = vpop.f32.mrb[46].mxu1  ;;  %6351 = vmatprep.subr.bf16.mxu1 %v6350_v39 }
0x1099   :  { %v2640_v41 = vpop.f32.mrb[47].mxu1  ;;  %6353 = vmatpush3.bf16.msra.mxu1 %v6350_v39 }
0x109a   :  { %v6354_v42 = vpack.c.bf16 %v5827_v40, %v2640_v41 }
0x109c   :  { %6355 = vmatprep.subr.bf16.mxu1 %v6354_v42 }
0x109d   :  { %6357 = vmatpush3.bf16.msra.mxu1 %v6354_v42 }
0x109e   :  { %6367 = vmatprep.subr.bf16.mxu1 %v6366_v33 }
0x10a0   :  { %5851 = vmatmul.mubr.msk.f32.vlgmr.msra.gmra.mrb[48].mxu1 %vm40_vm0, %v5838_v31 }
0x10a1   :  { %5853 = vmatprep.mubr.msk.f32.mxu1 %vm40_vm0, %v2737_v35  ;;  %6369 = vmatpush3.bf16.msra.mxu1 %v6366_v33 }
0x10a2   :  { %6371 = vmatprep.subr.bf16.mxu1 %v6370_v36 }
0x10a4   :  { %5854 = vmatmul.mubr.msk.f32.gmra.mrb[50].mxu1 %vm40_vm0, %v5841_v34 }
0x10a5   :  { %6373 = vmatpush3.bf16.msra.mxu1 %v6370_v36 }
0x1173   :  { %v5852_v43 = vpop.f32.mrb[48].mxu1 }
0x1174   :  { %v2844_v44 = vmul.f32 0.5, %v5852_v43  ;;  %v2824_v45 = vpop.f32.mrb[49].mxu1 }
0x1175   :  { %v2843_v46 = vmul.f32 0.5, %v2824_v45 }
0x1176   :  { %v2848_v47 = vsub.f32 %v6808_v3, %v2844_v44 }
0x1177   :  { %v2847_v48 = vsub.f32 %v6811_v4, %v2843_v46  ;;  %v5855_v49 = vpop.f32.mrb[50].mxu1 }
0x1178   :  { %v2846_v58 = vmul.f32 0.5, %v5855_v49  ;;  %v2834_v59 = vpop.f32.mrb[51].mxu1 }
0x1179   :  { %v2845_v60 = vmul.f32 0.5, %v2834_v59  ;;  %5878 = vmatprep.mubr.msk.f32.mxu1 %vm40_vm0, %v2847_v48  ;;  %v6358_v61 = vpack.c.bf16 %v2848_v47, %v2847_v48 }
0x117a   :  { %v2850_v62 = vsub.f32 %v6814_v22, %v2846_v58  ;;  %5879 = vmatmul.mubr.msk.f32.vlgmr.msra.gmra.mrb[52].mxu1 %vm40_vm0, %v2848_v47 }
0x117b   :  { %v2849_v63 = vsub.f32 %v6818_v5, %v2845_v60  ;;  %6359 = vmatprep.subr.bf16.mxu0 %v6358_v61 }
0x117c   :  { %6361 = vmatpush3.bf16.msra.mxu0 %v6358_v61 }
0x117d   :  { %5881 = vmatprep.mubr.msk.f32.mxu1 %vm40_vm0, %v2849_v63  ;;  %v6362_v0 = vpack.c.bf16 %v2850_v62, %v2849_v63 }
0x117e   :  { %5882 = vmatmul.mubr.msk.f32.gmra.mrb[54].mxu1 %vm40_vm0, %v2850_v62 }
0x117f   :  { %6363 = vmatprep.subr.bf16.mxu0 %v6362_v0 }
0x1180   :  { %6365 = vmatpush3.bf16.msra.mxu0 %v6362_v0 }
0x1183   :  { %5865 = vmatmul.mubr.msk.f32.vlgmr.msra.gmra.mrb[56].mxu0 %vm40_vm0, %v5824_v37 }
0x1184   :  { %5867 = vmatprep.mubr.msk.f32.mxu0 %vm40_vm0, %v2640_v41 }
0x1187   :  { %5868 = vmatmul.mubr.msk.f32.gmra.mrb[58].mxu0 %vm40_vm0, %v5827_v40 }
0x124d   :  { %v5880_v1 = vpop.f32.mrb[52].mxu1 }
0x124e   :  { %v3026_v6 = vpop.f32.mrb[53].mxu1 }
0x124f   :  { %v6390_v10 = vpack.c.bf16 %v5880_v1, %v3026_v6  ;;  %5892 = vmatprep.mubr.msk.f32.mxu0 %vm40_vm0, %v3026_v6 }
0x1251   :  { %v5883_v13 = vpop.f32.mrb[54].mxu1 }
0x1252   :  { %v3036_v15 = vpop.f32.mrb[55].mxu1 }
0x1253   :  { %v6394_v16 = vpack.c.bf16 %v5883_v13, %v3036_v15 }
0x1256   :  { %v5866_v17 = vpop.f32.mrb[56].mxu0 }
0x1257   :  { %v2929_v12 = vpop.f32.mrb[57].mxu0 }
0x1258   :  { %v6374_v14 = vpack.c.bf16 %v5866_v17, %v2929_v12  ;;  %5906 = vmatprep.mubr.msk.f32.mxu1 %vm40_vm0, %v2929_v12 }
0x125a   :  { %v5869_v18 = vpop.f32.mrb[58].mxu0  ;;  %6375 = vmatprep.subr.bf16.mxu0 %v6374_v14 }
0x125b   :  { %v2939_v19 = vpop.f32.mrb[59].mxu0  ;;  %6377 = vmatpush3.bf16.msra.mxu0 %v6374_v14 }
0x125c   :  { %v6378_v20 = vpack.c.bf16 %v5869_v18, %v2939_v19 }
0x125e   :  { %6379 = vmatprep.subr.bf16.mxu0 %v6378_v20 }
0x125f   :  { %6381 = vmatpush3.bf16.msra.mxu0 %v6378_v20 }
0x1260   :  { %6391 = vmatprep.subr.bf16.mxu0 %v6390_v10 }
0x1262   :  { %5893 = vmatmul.mubr.msk.f32.vlgmr.msra.gmra.mrb[60].mxu0 %vm40_vm0, %v5880_v1 }
0x1263   :  { %5895 = vmatprep.mubr.msk.f32.mxu0 %vm40_vm0, %v3036_v15  ;;  %6393 = vmatpush3.bf16.msra.mxu0 %v6390_v10 }
0x1264   :  { %6395 = vmatprep.subr.bf16.mxu0 %v6394_v16 }
0x1266   :  { %5896 = vmatmul.mubr.msk.f32.gmra.mrb[62].mxu0 %vm40_vm0, %v5883_v13 }
0x1267   :  { %6397 = vmatpush3.bf16.msra.mxu0 %v6394_v16 }
0x1335   :  { %v5894_v9 = vpop.f32.mrb[60].mxu0 }
0x1336   :  { %v3143_v8 = vmul.f32 0.5, %v5894_v9  ;;  %v3123_v23 = vpop.f32.mrb[61].mxu0 }
0x1337   :  { %v3142_v11 = vmul.f32 0.5, %v3123_v23 }
0x1338   :  { %v3147_v25 = vsub.f32 %v6808_v3, %v3143_v8 }
0x1339   :  { %v3146_v26 = vsub.f32 %v6811_v4, %v3142_v11  ;;  %v5897_v7 = vpop.f32.mrb[62].mxu0 }
0x133a   :  { %v3145_v27 = vmul.f32 0.5, %v5897_v7  ;;  %v3133_v24 = vpop.f32.mrb[63].mxu0 }
0x133b   :  { %v3144_v21 = vmul.f32 0.5, %v3133_v24  ;;  %5920 = vmatprep.mubr.msk.f32.mxu0 %vm40_vm0, %v3146_v26  ;;  %v6382_v28 = vpack.c.bf16 %v3147_v25, %v3146_v26 }
0x133c   :  { %v3149_v29 = vsub.f32 %v6814_v22, %v3145_v27  ;;  %5921 = vmatmul.mubr.msk.f32.vlgmr.msra.gmra.mrb[64].mxu0 %vm40_vm0, %v3147_v25 }
0x133d   :  { %v3148_v30 = vsub.f32 %v6818_v5, %v3144_v21  ;;  %6383 = vmatprep.subr.bf16.mxu1 %v6382_v28 }
0x133e   :  { %6385 = vmatpush3.bf16.msra.mxu1 %v6382_v28 }
0x133f   :  { %5923 = vmatprep.mubr.msk.f32.mxu0 %vm40_vm0, %v3148_v30  ;;  %v6386_v31 = vpack.c.bf16 %v3149_v29, %v3148_v30 }
0x1340   :  { %5924 = vmatmul.mubr.msk.f32.gmra.mrb[66].mxu0 %vm40_vm0, %v3149_v29 }
0x1341   :  { %6387 = vmatprep.subr.bf16.mxu1 %v6386_v31 }
0x1342   :  { %6389 = vmatpush3.bf16.msra.mxu1 %v6386_v31 }
0x1345   :  { %5907 = vmatmul.mubr.msk.f32.vlgmr.msra.gmra.mrb[56].mxu1 %vm40_vm0, %v5866_v17 }
0x1346   :  { %5909 = vmatprep.mubr.msk.f32.mxu1 %vm40_vm0, %v2939_v19 }
0x1349   :  { %5910 = vmatmul.mubr.msk.f32.gmra.mrb[58].mxu1 %vm40_vm0, %v5869_v18 }
0x140f   :  { %v5922_v32 = vpop.f32.mrb[64].mxu0 }
0x1410   :  { %v3325_v33 = vpop.f32.mrb[65].mxu0 }
0x1411   :  { %v6414_v34 = vpack.c.bf16 %v5922_v32, %v3325_v33  ;;  %5934 = vmatprep.mubr.msk.f32.mxu1 %vm40_vm0, %v3325_v33 }
0x1413   :  { %v5925_v35 = vpop.f32.mrb[66].mxu0 }
0x1414   :  { %v3335_v36 = vpop.f32.mrb[67].mxu0 }
0x1415   :  { %v6418_v37 = vpack.c.bf16 %v5925_v35, %v3335_v36 }
0x1418   :  { %v5908_v38 = vpop.f32.mrb[56].mxu1 }
0x1419   :  { %v3228_v39 = vpop.f32.mrb[57].mxu1 }
0x141a   :  { %v6398_v40 = vpack.c.bf16 %v5908_v38, %v3228_v39  ;;  %5948 = vmatprep.mubr.msk.f32.mxu0 %vm40_vm0, %v3228_v39 }
0x141c   :  { %v5911_v41 = vpop.f32.mrb[58].mxu1  ;;  %6399 = vmatprep.subr.bf16.mxu1 %v6398_v40 }
0x141d   :  { %v3238_v42 = vpop.f32.mrb[59].mxu1  ;;  %6401 = vmatpush3.bf16.msra.mxu1 %v6398_v40 }
0x141e   :  { %v6402_v43 = vpack.c.bf16 %v5911_v41, %v3238_v42 }
0x1420   :  { %6403 = vmatprep.subr.bf16.mxu1 %v6402_v43 }
0x1421   :  { %6405 = vmatpush3.bf16.msra.mxu1 %v6402_v43 }
0x1422   :  { %6415 = vmatprep.subr.bf16.mxu1 %v6414_v34 }
0x1424   :  { %5935 = vmatmul.mubr.msk.f32.vlgmr.msra.gmra.mrb[60].mxu1 %vm40_vm0, %v5922_v32 }
0x1425   :  { %5937 = vmatprep.mubr.msk.f32.mxu1 %vm40_vm0, %v3335_v36  ;;  %6417 = vmatpush3.bf16.msra.mxu1 %v6414_v34 }
0x1426   :  { %6419 = vmatprep.subr.bf16.mxu1 %v6418_v37 }
0x1428   :  { %5938 = vmatmul.mubr.msk.f32.gmra.mrb[62].mxu1 %vm40_vm0, %v5925_v35 }
0x1429   :  { %6421 = vmatpush3.bf16.msra.mxu1 %v6418_v37 }
0x14f7   :  { %v5936_v44 = vpop.f32.mrb[60].mxu1 }
0x14f8   :  { %v3442_v45 = vmul.f32 0.5, %v5936_v44  ;;  %v3422_v46 = vpop.f32.mrb[61].mxu1 }
0x14f9   :  { %v3441_v47 = vmul.f32 0.5, %v3422_v46 }
0x14fa   :  { %v3446_v48 = vsub.f32 %v6808_v3, %v3442_v45 }
0x14fb   :  { %v3445_v49 = vsub.f32 %v6811_v4, %v3441_v47  ;;  %v5939_v58 = vpop.f32.mrb[62].mxu1 }
0x14fc   :  { %v3444_v59 = vmul.f32 0.5, %v5939_v58  ;;  %v3432_v60 = vpop.f32.mrb[63].mxu1 }
0x14fd   :  { %v3443_v61 = vmul.f32 0.5, %v3432_v60  ;;  %5962 = vmatprep.mubr.msk.f32.mxu1 %vm40_vm0, %v3445_v49  ;;  %v6406_v62 = vpack.c.bf16 %v3446_v48, %v3445_v49 }
0x14fe   :  { %v3448_v63 = vsub.f32 %v6814_v22, %v3444_v59  ;;  %5963 = vmatmul.mubr.msk.f32.vlgmr.msra.gmra.mrb[64].mxu1 %vm40_vm0, %v3446_v48 }
0x14ff   :  { %v3447_v0 = vsub.f32 %v6818_v5, %v3443_v61  ;;  %6407 = vmatprep.subr.bf16.mxu0 %v6406_v62 }
0x1500   :  { %6409 = vmatpush3.bf16.msra.mxu0 %v6406_v62 }
0x1501   :  { %5965 = vmatprep.mubr.msk.f32.mxu1 %vm40_vm0, %v3447_v0  ;;  %v6410_v1 = vpack.c.bf16 %v3448_v63, %v3447_v0 }
0x1502   :  { %5966 = vmatmul.mubr.msk.f32.gmra.mrb[66].mxu1 %vm40_vm0, %v3448_v63 }
0x1503   :  { %6411 = vmatprep.subr.bf16.mxu0 %v6410_v1 }
0x1504   :  { %6413 = vmatpush3.bf16.msra.mxu0 %v6410_v1 }
0x1507   :  { %5949 = vmatmul.mubr.msk.f32.vlgmr.msra.gmra.mrb[68].mxu0 %vm40_vm0, %v5908_v38 }
0x1508   :  { %5951 = vmatprep.mubr.msk.f32.mxu0 %vm40_vm0, %v3238_v42 }
0x150b   :  { %5952 = vmatmul.mubr.msk.f32.gmra.mrb[70].mxu0 %vm40_vm0, %v5911_v41 }
0x15d1   :  { %v5964_v6 = vpop.f32.mrb[64].mxu1 }
0x15d2   :  { %v3624_v10 = vpop.f32.mrb[65].mxu1 }
0x15d3   :  { %v6438_v13 = vpack.c.bf16 %v5964_v6, %v3624_v10  ;;  %5976 = vmatprep.mubr.msk.f32.mxu0 %vm40_vm0, %v3624_v10 }
0x15d5   :  { %v5967_v15 = vpop.f32.mrb[66].mxu1 }
0x15d6   :  { %v3634_v16 = vpop.f32.mrb[67].mxu1 }
0x15d7   :  { %v6442_v17 = vpack.c.bf16 %v5967_v15, %v3634_v16 }
0x15da   :  { %v5950_v12 = vpop.f32.mrb[68].mxu0 }
0x15db   :  { %v3527_v14 = vpop.f32.mrb[69].mxu0 }
0x15dc   :  { %v6422_v18 = vpack.c.bf16 %v5950_v12, %v3527_v14  ;;  %5990 = vmatprep.mubr.msk.f32.mxu1 %vm40_vm0, %v3527_v14 }
0x15de   :  { %v5953_v19 = vpop.f32.mrb[70].mxu0  ;;  %6423 = vmatprep.subr.bf16.mxu0 %v6422_v18 }
0x15df   :  { %v3537_v20 = vpop.f32.mrb[71].mxu0  ;;  %6425 = vmatpush3.bf16.msra.mxu0 %v6422_v18 }
0x15e0   :  { %v6426_v9 = vpack.c.bf16 %v5953_v19, %v3537_v20 }
0x15e2   :  { %6427 = vmatprep.subr.bf16.mxu0 %v6426_v9 }
0x15e3   :  { %6429 = vmatpush3.bf16.msra.mxu0 %v6426_v9 }
0x15e4   :  { %6439 = vmatprep.subr.bf16.mxu0 %v6438_v13 }
0x15e6   :  { %5977 = vmatmul.mubr.msk.f32.vlgmr.msra.gmra.mrb[72].mxu0 %vm40_vm0, %v5964_v6 }
0x15e7   :  { %5979 = vmatprep.mubr.msk.f32.mxu0 %vm40_vm0, %v3634_v16  ;;  %6441 = vmatpush3.bf16.msra.mxu0 %v6438_v13 }
0x15e8   :  { %6443 = vmatprep.subr.bf16.mxu0 %v6442_v17 }
0x15ea   :  { %5980 = vmatmul.mubr.msk.f32.gmra.mrb[74].mxu0 %vm40_vm0, %v5967_v15 }
0x15eb   :  { %6445 = vmatpush3.bf16.msra.mxu0 %v6442_v17 }
0x16b9   :  { %v5978_v8 = vpop.f32.mrb[72].mxu0 }
0x16ba   :  { %v3741_v23 = vmul.f32 0.5, %v5978_v8  ;;  %v3721_v11 = vpop.f32.mrb[73].mxu0 }
0x16bb   :  { %v3740_v25 = vmul.f32 0.5, %v3721_v11 }
0x16bc   :  { %v3745_v26 = vsub.f32 %v6808_v3, %v3741_v23 }
0x16bd   :  { %v3744_v7 = vsub.f32 %v6811_v4, %v3740_v25  ;;  %v5981_v27 = vpop.f32.mrb[74].mxu0 }
0x16be   :  { %v3743_v24 = vmul.f32 0.5, %v5981_v27  ;;  %v3731_v21 = vpop.f32.mrb[75].mxu0 }
0x16bf   :  { %v3742_v28 = vmul.f32 0.5, %v3731_v21  ;;  %6004 = vmatprep.mubr.msk.f32.mxu0 %vm40_vm0, %v3744_v7  ;;  %v6430_v29 = vpack.c.bf16 %v3745_v26, %v3744_v7 }
0x16c0   :  { %v3747_v30 = vsub.f32 %v6814_v22, %v3743_v24  ;;  %6005 = vmatmul.mubr.msk.f32.vlgmr.msra.gmra.mrb[76].mxu0 %vm40_vm0, %v3745_v26 }
0x16c1   :  { %v3746_v31 = vsub.f32 %v6818_v5, %v3742_v28  ;;  %6431 = vmatprep.subr.bf16.mxu1 %v6430_v29 }
0x16c2   :  { %6433 = vmatpush3.bf16.msra.mxu1 %v6430_v29 }
0x16c3   :  { %6007 = vmatprep.mubr.msk.f32.mxu0 %vm40_vm0, %v3746_v31  ;;  %v6434_v32 = vpack.c.bf16 %v3747_v30, %v3746_v31 }
0x16c4   :  { %6008 = vmatmul.mubr.msk.f32.gmra.mrb[78].mxu0 %vm40_vm0, %v3747_v30 }
0x16c5   :  { %6435 = vmatprep.subr.bf16.mxu1 %v6434_v32 }
0x16c6   :  { %6437 = vmatpush3.bf16.msra.mxu1 %v6434_v32 }
0x16c9   :  { %5991 = vmatmul.mubr.msk.f32.vlgmr.msra.gmra.mrb[68].mxu1 %vm40_vm0, %v5950_v12 }
0x16ca   :  { %5993 = vmatprep.mubr.msk.f32.mxu1 %vm40_vm0, %v3537_v20 }
0x16cd   :  { %5994 = vmatmul.mubr.msk.f32.gmra.mrb[70].mxu1 %vm40_vm0, %v5953_v19 }
0x1793   :  { %v6006_v33 = vpop.f32.mrb[76].mxu0 }
0x1794   :  { %v3923_v34 = vpop.f32.mrb[77].mxu0 }
0x1795   :  { %v6462_v35 = vpack.c.bf16 %v6006_v33, %v3923_v34  ;;  %6018 = vmatprep.mubr.msk.f32.mxu1 %vm40_vm0, %v3923_v34 }
0x1797   :  { %v6009_v36 = vpop.f32.mrb[78].mxu0 }
0x1798   :  { %v3933_v37 = vpop.f32.mrb[79].mxu0 }
0x1799   :  { %v6466_v38 = vpack.c.bf16 %v6009_v36, %v3933_v37 }
0x179c   :  { %v5992_v39 = vpop.f32.mrb[68].mxu1 }
0x179d   :  { %v3826_v40 = vpop.f32.mrb[69].mxu1 }
0x179e   :  { %v6446_v41 = vpack.c.bf16 %v5992_v39, %v3826_v40  ;;  %6032 = vmatprep.mubr.msk.f32.mxu0 %vm40_vm0, %v3826_v40 }
0x17a0   :  { %v5995_v42 = vpop.f32.mrb[70].mxu1  ;;  %6447 = vmatprep.subr.bf16.mxu1 %v6446_v41 }
0x17a1   :  { %v3836_v43 = vpop.f32.mrb[71].mxu1  ;;  %6449 = vmatpush3.bf16.msra.mxu1 %v6446_v41 }
0x17a2   :  { %v6450_v44 = vpack.c.bf16 %v5995_v42, %v3836_v43 }
0x17a4   :  { %6451 = vmatprep.subr.bf16.mxu1 %v6450_v44 }
0x17a5   :  { %6453 = vmatpush3.bf16.msra.mxu1 %v6450_v44 }
0x17a6   :  { %6463 = vmatprep.subr.bf16.mxu1 %v6462_v35 }
0x17a8   :  { %6019 = vmatmul.mubr.msk.f32.vlgmr.msra.gmra.mrb[72].mxu1 %vm40_vm0, %v6006_v33 }
0x17a9   :  { %6021 = vmatprep.mubr.msk.f32.mxu1 %vm40_vm0, %v3933_v37  ;;  %6465 = vmatpush3.bf16.msra.mxu1 %v6462_v35 }
0x17aa   :  { %6467 = vmatprep.subr.bf16.mxu1 %v6466_v38 }
0x17ac   :  { %6022 = vmatmul.mubr.msk.f32.gmra.mrb[74].mxu1 %vm40_vm0, %v6009_v36 }
0x17ad   :  { %6469 = vmatpush3.bf16.msra.mxu1 %v6466_v38 }
0x187b   :  { %v6020_v45 = vpop.f32.mrb[72].mxu1 }
0x187c   :  { %v4040_v46 = vmul.f32 0.5, %v6020_v45  ;;  %v4020_v47 = vpop.f32.mrb[73].mxu1 }
0x187d   :  { %v4039_v48 = vmul.f32 0.5, %v4020_v47 }
0x187e   :  { %v4044_v49 = vsub.f32 %v6808_v3, %v4040_v46 }
0x187f   :  { %v4043_v58 = vsub.f32 %v6811_v4, %v4039_v48  ;;  %v6023_v59 = vpop.f32.mrb[74].mxu1 }
0x1880   :  { %v4042_v60 = vmul.f32 0.5, %v6023_v59  ;;  %v4030_v61 = vpop.f32.mrb[75].mxu1 }
0x1881   :  { %v4041_v62 = vmul.f32 0.5, %v4030_v61  ;;  %6046 = vmatprep.mubr.msk.f32.mxu1 %vm40_vm0, %v4043_v58  ;;  %v6454_v63 = vpack.c.bf16 %v4044_v49, %v4043_v58 }
0x1882   :  { %v4046_v0 = vsub.f32 %v6814_v22, %v4042_v60  ;;  %6047 = vmatmul.mubr.msk.f32.vlgmr.msra.gmra.mrb[76].mxu1 %vm40_vm0, %v4044_v49 }
0x1883   :  { %v4045_v1 = vsub.f32 %v6818_v5, %v4041_v62  ;;  %6455 = vmatprep.subr.bf16.mxu0 %v6454_v63 }
0x1884   :  { %6457 = vmatpush3.bf16.msra.mxu0 %v6454_v63 }
0x1885   :  { %6049 = vmatprep.mubr.msk.f32.mxu1 %vm40_vm0, %v4045_v1  ;;  %v6458_v6 = vpack.c.bf16 %v4046_v0, %v4045_v1 }
0x1886   :  { %6050 = vmatmul.mubr.msk.f32.gmra.mrb[78].mxu1 %vm40_vm0, %v4046_v0 }
0x1887   :  { %6459 = vmatprep.subr.bf16.mxu0 %v6458_v6 }
0x1888   :  { %6461 = vmatpush3.bf16.msra.mxu0 %v6458_v6 }
0x188b   :  { %6033 = vmatmul.mubr.msk.f32.vlgmr.msra.gmra.mrb[80].mxu0 %vm40_vm0, %v5992_v39 }
0x188c   :  { %6035 = vmatprep.mubr.msk.f32.mxu0 %vm40_vm0, %v3836_v43 }
0x188f   :  { %6036 = vmatmul.mubr.msk.f32.gmra.mrb[82].mxu0 %vm40_vm0, %v5995_v42 }
0x1955   :  { %v6048_v10 = vpop.f32.mrb[76].mxu1 }
0x1956   :  { %v4222_v13 = vpop.f32.mrb[77].mxu1 }
0x1957   :  { %v6486_v15 = vpack.c.bf16 %v6048_v10, %v4222_v13  ;;  %6060 = vmatprep.mubr.msk.f32.mxu0 %vm40_vm0, %v4222_v13 }
0x1959   :  { %v6051_v16 = vpop.f32.mrb[78].mxu1 }
0x195a   :  { %v4232_v17 = vpop.f32.mrb[79].mxu1 }
0x195b   :  { %v6490_v12 = vpack.c.bf16 %v6051_v16, %v4232_v17 }
0x195e   :  { %v6034_v14 = vpop.f32.mrb[80].mxu0 }
0x195f   :  { %v4125_v18 = vpop.f32.mrb[81].mxu0 }
0x1960   :  { %v6470_v19 = vpack.c.bf16 %v6034_v14, %v4125_v18  ;;  %6074 = vmatprep.mubr.msk.f32.mxu1 %vm40_vm0, %v4125_v18 }
0x1962   :  { %v6037_v20 = vpop.f32.mrb[82].mxu0  ;;  %6471 = vmatprep.subr.bf16.mxu0 %v6470_v19 }
0x1963   :  { %v4135_v9 = vpop.f32.mrb[83].mxu0  ;;  %6473 = vmatpush3.bf16.msra.mxu0 %v6470_v19 }
0x1964   :  { %v6474_v8 = vpack.c.bf16 %v6037_v20, %v4135_v9 }
0x1966   :  { %6475 = vmatprep.subr.bf16.mxu0 %v6474_v8 }
0x1967   :  { %6477 = vmatpush3.bf16.msra.mxu0 %v6474_v8 }
0x1968   :  { %6487 = vmatprep.subr.bf16.mxu0 %v6486_v15 }
0x196a   :  { %6061 = vmatmul.mubr.msk.f32.vlgmr.msra.gmra.mrb[84].mxu0 %vm40_vm0, %v6048_v10 }
0x196b   :  { %6063 = vmatprep.mubr.msk.f32.mxu0 %vm40_vm0, %v4232_v17  ;;  %6489 = vmatpush3.bf16.msra.mxu0 %v6486_v15 }
0x196c   :  { %6491 = vmatprep.subr.bf16.mxu0 %v6490_v12 }
0x196e   :  { %6064 = vmatmul.mubr.msk.f32.gmra.mrb[86].mxu0 %vm40_vm0, %v6051_v16 }
0x196f   :  { %6493 = vmatpush3.bf16.msra.mxu0 %v6490_v12 }
0x1a3d   :  { %v6062_v23 = vpop.f32.mrb[84].mxu0 }
0x1a3e   :  { %v4339_v11 = vmul.f32 0.5, %v6062_v23  ;;  %v4319_v25 = vpop.f32.mrb[85].mxu0 }
0x1a3f   :  { %v4338_v26 = vmul.f32 0.5, %v4319_v25 }
0x1a40   :  { %v4343_v7 = vsub.f32 %v6808_v3, %v4339_v11 }
0x1a41   :  { %v4342_v27 = vsub.f32 %v6811_v4, %v4338_v26  ;;  %v6065_v24 = vpop.f32.mrb[86].mxu0 }
0x1a42   :  { %v4341_v21 = vmul.f32 0.5, %v6065_v24  ;;  %v4329_v28 = vpop.f32.mrb[87].mxu0 }
0x1a43   :  { %v4340_v29 = vmul.f32 0.5, %v4329_v28  ;;  %6088 = vmatprep.mubr.msk.f32.mxu0 %vm40_vm0, %v4342_v27  ;;  %v6478_v30 = vpack.c.bf16 %v4343_v7, %v4342_v27 }
0x1a44   :  { %v4345_v31 = vsub.f32 %v6814_v22, %v4341_v21  ;;  %6089 = vmatmul.mubr.msk.f32.vlgmr.msra.gmra.mrb[88].mxu0 %vm40_vm0, %v4343_v7 }
0x1a45   :  { %v4344_v32 = vsub.f32 %v6818_v5, %v4340_v29  ;;  %6479 = vmatprep.subr.bf16.mxu1 %v6478_v30 }
0x1a46   :  { %6481 = vmatpush3.bf16.msra.mxu1 %v6478_v30 }
0x1a47   :  { %6091 = vmatprep.mubr.msk.f32.mxu0 %vm40_vm0, %v4344_v32  ;;  %v6482_v33 = vpack.c.bf16 %v4345_v31, %v4344_v32 }
0x1a48   :  { %6092 = vmatmul.mubr.msk.f32.gmra.mrb[90].mxu0 %vm40_vm0, %v4345_v31 }
0x1a49   :  { %6483 = vmatprep.subr.bf16.mxu1 %v6482_v33 }
0x1a4a   :  { %6485 = vmatpush3.bf16.msra.mxu1 %v6482_v33 }
0x1a4d   :  { %6075 = vmatmul.mubr.msk.f32.vlgmr.msra.gmra.mrb[80].mxu1 %vm40_vm0, %v6034_v14 }
0x1a4e   :  { %6077 = vmatprep.mubr.msk.f32.mxu1 %vm40_vm0, %v4135_v9 }
0x1a51   :  { %6078 = vmatmul.mubr.msk.f32.gmra.mrb[82].mxu1 %vm40_vm0, %v6037_v20 }
0x1b17   :  { %v6090_v34 = vpop.f32.mrb[88].mxu0 }
0x1b18   :  { %v4521_v35 = vpop.f32.mrb[89].mxu0 }
0x1b19   :  { %v6502_v36 = vpack.c.bf16 %v6090_v34, %v4521_v35  ;;  %6102 = vmatprep.mubr.msk.f32.mxu1 %vm40_vm0, %v4521_v35 }
0x1b1b   :  { %v6093_v37 = vpop.f32.mrb[90].mxu0  ;;  %6503 = vmatprep.subr.bf16.mxu0 %v6502_v36 }
0x1b1c   :  { %v4531_v38 = vpop.f32.mrb[91].mxu0  ;;  %6505 = vmatpush3.bf16.msra.mxu0 %v6502_v36 }
0x1b1d   :  { %v6506_v39 = vpack.c.bf16 %v6093_v37, %v4531_v38 }
0x1b1f   :  { %6507 = vmatprep.subr.bf16.mxu0 %v6506_v39 }
0x1b20   :  { %v6076_v40 = vpop.f32.mrb[80].mxu1  ;;  %6509 = vmatpush3.bf16.msra.mxu0 %v6506_v39 }
0x1b21   :  { %v4424_v41 = vpop.f32.mrb[81].mxu1 }
0x1b22   :  { %v6494_v42 = vpack.c.bf16 %v6076_v40, %v4424_v41 }
0x1b24   :  { %v6079_v43 = vpop.f32.mrb[82].mxu1  ;;  %6495 = vmatprep.subr.bf16.mxu1 %v6494_v42 }
0x1b25   :  { %v4434_v44 = vpop.f32.mrb[83].mxu1  ;;  %6497 = vmatpush3.bf16.msra.mxu1 %v6494_v42 }
0x1b26   :  { %v6498_v45 = vpack.c.bf16 %v6079_v43, %v4434_v44 }
0x1b28   :  { %6499 = vmatprep.subr.bf16.mxu1 %v6498_v45 }
0x1b29   :  { %6501 = vmatpush3.bf16.msra.mxu1 %v6498_v45 }
0x1b2c   :  { %6103 = vmatmul.mubr.msk.f32.vlgmr.msra.gmra.mrb[84].mxu1 %vm40_vm0, %v6090_v34 }
0x1b2d   :  { %6105 = vmatprep.mubr.msk.f32.mxu1 %vm40_vm0, %v4531_v38 }
0x1b30   :  { %6106 = vmatmul.mubr.msk.f32.gmra.mrb[86].mxu1 %vm40_vm0, %v6093_v37 }
0x1b31   :  { %6133 = vmatprep.mubr.msk.f32.mxu1 %vm40_vm0, %v6685_v53 }
0x1bff   :  { %v6104_v46 = vpop.f32.mrb[84].mxu1 }
0x1c00   :  { %v4638_v47 = vmul.f32 0.5, %v6104_v46  ;;  %v4618_v48 = vpop.f32.mrb[85].mxu1 }
0x1c01   :  { %v4637_v49 = vmul.f32 0.5, %v4618_v48 }
0x1c02   :  { %v4642_v60 = vsub.f32 %v6808_v3, %v4638_v47  ;;  %v6529_v3 = vpop.eup %6528 }
0x1c03   :  { %v4641_v58 = vsub.f32 %v6811_v4, %v4637_v49  ;;  %v6107_v59 = vpop.f32.mrb[86].mxu1  ;;  %v4743_v4 = vmul.f32 %v6529_v3, %v6782_v2 }
0x1c04   :  { %v4640_v61 = vmul.f32 0.5, %v6107_v59  ;;  %v4628_v62 = vpop.f32.mrb[87].mxu1 }
0x1c05   :  { %v4639_v63 = vmul.f32 0.5, %v4628_v62  ;;  %6116 = vmatprep.mubr.msk.f32.mxu0 %vm40_vm0, %v4641_v58  ;;  %v4745_v1 = vsel %vm4744_vm8, %v6782_v2, %v4743_v4 }
0x1c06   :  { %6117 = vmatmul.mubr.msk.f32.vlgmr.msra.gmra.mrb[92].mxu0 %vm40_vm0, %v4642_v60  ;;  %v4644_v53 = vsub.f32 %v6814_v22, %v4640_v61 }
0x1c07   :  { %v4643_v0 = vsub.f32 %v6818_v5, %v4639_v63  ;;  %v4747_v5 = vand.u32 2147483648, %v6782_v2 }
0x1c09   :  { %6119 = vmatprep.mubr.msk.f32.mxu0 %vm40_vm0, %v4643_v0  ;;  %v4748_v6 = vsel %vm4746_vm9, %v4747_v5, %v4745_v1 }
0x1c0a   :  { %6120 = vmatmul.mubr.msk.f32.gmra.mrb[94].mxu0 %vm40_vm0, %v4644_v53 }
0x1c0b   :  { %6130 = vmatprep.mubr.msk.f32.mxu0 %vm40_vm0, %v6681_v51 }
0x1cd9   :  { %v6118_v22 = vpop.f32.mrb[92].mxu0 }
0x1cda   :  { %v4750_v10 = vmul.f32 %v6118_v22, %v4748_v6  ;;  %v4723_v13 = vpop.f32.mrb[93].mxu0 }
0x1cdb   :  { %v4749_v15 = vmul.f32 %v4748_v6, %v4723_v13 }
0x1cdd   :  { %v6510_v16 = vpack.c.bf16 %v4750_v10, %v4749_v15  ;;  %v6121_v51 = vpop.f32.mrb[94].mxu0 }
0x1cde   :  { %v4752_v17 = vmul.f32 %v6121_v51, %v4748_v6  ;;  %v4733_v12 = vpop.f32.mrb[95].mxu0 }
0x1cdf   :  { %v4751_v14 = vmul.f32 %v4748_v6, %v4733_v12  ;;  %6511 = vmatprep.subr.bf16.mxu0 %v6510_v16  ;;  %6518 = vmatprep.subr.bf16.mxu1 %v6510_v16 }
0x1ce0   :  { %6513 = vmatpush3.bf16.msra.mxu0 %v6510_v16  ;;  %6520 = vmatpush3.bf16.msra.mxu1 %v6510_v16 }
0x1ce1   :  { %v6514_v18 = vpack.c.bf16 %v4752_v17, %v4751_v14 }
0x1ce3   :  { %6515 = vmatprep.subr.bf16.mxu0 %v6514_v18  ;;  %6519 = vmatprep.subr.bf16.mxu1 %v6514_v18 }
0x1ce4   :  { %6517 = vmatpush3.bf16.msra.mxu0 %v6514_v18  ;;  %6521 = vmatpush3.bf16.msra.mxu1 %v6514_v18 }
0x1ce7   :  { %6131 = vmatmul.mubr.msk.f32.vlgmr.msra.gmra.mrb[96].mxu0 %vm40_vm0, %v6683_v52  ;;  %6134 = vmatmul.mubr.msk.f32.vlgmr.msra.gmra.mrb[88].mxu1 %vm40_vm0, %v6687_v54 }
0x1ce8   :  { %6136 = vmatprep.mubr.msk.f32.mxu1 %vm40_vm0, %v6689_v55 }
0x1ceb   :  { %6137 = vmatmul.mubr.msk.f32.gmra.mrb[90].mxu1 %vm40_vm0, %v6691_v56 }
0x1cec   :  { %6139 = vmatprep.mubr.msk.f32.mxu1 %vm40_vm0, %v6679_v50 }
0x1cef   :  { %6140 = vmatmul.mubr.msk.f32.gmra.mrb[92].mxu1 %vm40_vm0, %v6693_v57 }
0x1dba   :  { %v6132_v2 = vpop.f32.mrb[96].mxu0  ;;  %v6135_v19 = vpop.f32.mrb[88].mxu1 }
0x1dbb   :  { %4883 = vst.msk [vmem:[%s7094_s6 + $0x8] sm:$0xff] %vm40_vm0, %v6132_v2  ;;  %4885 = vst.msk [vmem:[%s7094_s6 + $0x18] sm:$0xff] %vm40_vm0, %v6135_v19  ;;  %v4843_v52 = vpop.f32.mrb[97].mxu0  ;;  %v4853_v54 = vpop.f32.mrb[89].mxu1 }
0x1dbc   :  { %4882 = vst.msk [vmem:[%s7094_s6] sm:$0xff] %vm40_vm0, %v4843_v52  ;;  %4884 = vst.msk [vmem:[%s7094_s6 + $0x10] sm:$0xff] %vm40_vm0, %v4853_v54 }
0x1dbe   :  { %v6138_v50 = vpop.f32.mrb[90].mxu1 }
0x1dbf   :  { %4887 = vst.msk [vmem:[%s7094_s6 + $0x28] sm:$0xff] %vm40_vm0, %v6138_v50  ;;  %v4863_v55 = vpop.f32.mrb[91].mxu1 }
0x1dc0   :  { %4886 = vst.msk [vmem:[%s7094_s6 + $0x20] sm:$0xff] %vm40_vm0, %v4863_v55 }
0x1dc2   :  { %v6141_v56 = vpop.f32.mrb[92].mxu1 }
0x1dc3   :  { %4889 = vst.msk [vmem:[%s7094_s6 + $0x38] sm:$0xff] %vm40_vm0, %v6141_v56  ;;  %v4873_v57 = vpop.f32.mrb[93].mxu1 }
0x1dc4   :  { %4888 = vst.msk [vmem:[%s7094_s6 + $0x30] sm:$0xff] %vm40_vm0, %v4873_v57 }

</bundles_post_ra>
